<compile_context>
chip_gen: v5e
topology: v5e:2x2
jax: 0.10.0
libtpu: 0.0.40
codegen_flags: <defaults>
</compile_context>

<pallas_src>
import jax
import jax.numpy as jnp
import numpy as np
from jax.experimental import pallas as pl
from jax.experimental.pallas import tpu as pltpu

_VMEM_LIMIT = 32 * 1024 * 1024    # scoped-VMEM limit requested from Mosaic (safe on v5e/v6e/v7x)
_VMEM_BUDGET = 24 * 1024 * 1024   # what our double-buffered block working set may use


# ---------------------------------------------------------------------------
# Resident (single-block) kernels — used when everything fits comfortably in VMEM.
# ---------------------------------------------------------------------------
def _resident_masked_kernel(x_ref, mask_ref, o_ref):
    x = x_ref[...].astype(jnp.float32)
    keep = mask_ref[...] > 0
    x_masked = jnp.where(keep, x, -jnp.inf)               # == x*m + (1 - 1/m)
    col_max = jnp.max(x_masked, axis=0, keepdims=True)    # (1, N)
    # torch .unsqueeze(-1): row i is shifted by col_max[i]
    x_exp = jnp.where(keep, jnp.exp(x - jnp.transpose(col_max)), 0.0)
    denom = jnp.sum(x_exp, axis=0, keepdims=True)         # (1, N)
    inv = pl.reciprocal(denom)                            # reciprocal before broadcast
    o_ref[...] = (x_exp * jnp.transpose(inv)).astype(o_ref.dtype)


def _resident_plain_kernel(x_ref, o_ref):
    x = x_ref[...].astype(jnp.float32)
    col_max = jnp.max(x, axis=0, keepdims=True)
    x_exp = jnp.exp(x - jnp.transpose(col_max))
    denom = jnp.sum(x_exp, axis=0, keepdims=True)
    inv = pl.reciprocal(denom)
    o_ref[...] = (x_exp * jnp.transpose(inv)).astype(o_ref.dtype)


# ---------------------------------------------------------------------------
# Tiled kernels — row blocks of shape (TM, N), stats vectors of shape (1, N).
# ---------------------------------------------------------------------------
def _colmax_masked_kernel(x_ref, mask_ref, colmax_ref):
    @pl.when(pl.program_id(0) == 0)
    def _init():
        colmax_ref[...] = jnp.full_like(colmax_ref, -jnp.inf)

    x = x_ref[...].astype(jnp.float32)
    xm = jnp.where(mask_ref[...] > 0, x, -jnp.inf)
    colmax_ref[...] = jnp.maximum(colmax_ref[...],
                                  jnp.max(xm, axis=0, keepdims=True))


def _colmax_plain_kernel(x_ref, colmax_ref):
    @pl.when(pl.program_id(0) == 0)
    def _init():
        colmax_ref[...] = jnp.full_like(colmax_ref, -jnp.inf)

    x = x_ref[...].astype(jnp.float32)
    colmax_ref[...] = jnp.maximum(colmax_ref[...],
                                  jnp.max(x, axis=0, keepdims=True))


def _denom_masked_kernel(x_ref, mask_ref, cm_ref, denom_ref):
    @pl.when(pl.program_id(0) == 0)
    def _init():
        denom_ref[...] = jnp.zeros_like(denom_ref)

    x = x_ref[...].astype(jnp.float32)
    keep = mask_ref[...] > 0
    cm_col = jnp.transpose(cm_ref[...])                    # (TM, 1): col-max for this block's rows
    x_exp = jnp.where(keep, jnp.exp(x - cm_col), 0.0)
    denom_ref[...] += jnp.sum(x_exp, axis=0, keepdims=True)


def _denom_plain_kernel(x_ref, cm_ref, denom_ref):
    @pl.when(pl.program_id(0) == 0)
    def _init():
        denom_ref[...] = jnp.zeros_like(denom_ref)

    x = x_ref[...].astype(jnp.float32)
    cm_col = jnp.transpose(cm_ref[...])
    denom_ref[...] += jnp.sum(jnp.exp(x - cm_col), axis=0, keepdims=True)


def _apply_masked_kernel(x_ref, mask_ref, cm_ref, denom_ref, o_ref):
    x = x_ref[...].astype(jnp.float32)
    keep = mask_ref[...] > 0
    cm_col = jnp.transpose(cm_ref[...])                        # (TM, 1)
    inv_col = jnp.transpose(pl.reciprocal(denom_ref[...]))     # (TM, 1)
    x_exp = jnp.where(keep, jnp.exp(x - cm_col), 0.0)
    o_ref[...] = (x_exp * inv_col).astype(o_ref.dtype)


def _apply_plain_kernel(x_ref, cm_ref, denom_ref, o_ref):
    x = x_ref[...].astype(jnp.float32)
    cm_col = jnp.transpose(cm_ref[...])
    inv_col = jnp.transpose(pl.reciprocal(denom_ref[...]))
    o_ref[...] = (jnp.exp(x - cm_col) * inv_col).astype(o_ref.dtype)


# ---------------------------------------------------------------------------
# Drivers
# ---------------------------------------------------------------------------
def _pick_block_rows(n_pad, bytes_per_row, requested=None):
    if requested is not None:
        if requested % 128 != 0 or n_pad % requested != 0:
            raise ValueError("block_rows must be a multiple of 128 that divides the padded N")
        return requested
    best = 128
    for tm in (128, 256, 512, 1024, 2048):
        if n_pad % tm == 0 and tm * bytes_per_row <= _VMEM_BUDGET:
            best = tm
    return best


def _masked_softmax_tiled(x, mask_i8, tm):
    n = x.shape[0]
    nb = n // tm
    row_block = pl.BlockSpec((tm, n), lambda i: (i, 0))
    vec_full = pl.BlockSpec((1, n), lambda i: (0, 0))      # resident accumulator
    vec_slice = pl.BlockSpec((1, tm), lambda i: (0, i))    # per-row-block slice of the stats
    params_acc = pltpu.CompilerParams(dimension_semantics=("arbitrary",),
                                      vmem_limit_bytes=_VMEM_LIMIT)
    params_par = pltpu.CompilerParams(dimension_semantics=("parallel",),
                                      vmem_limit_bytes=_VMEM_LIMIT)
    stats_shape = jax.ShapeDtypeStruct((1, n), jnp.float32)
    out_shape = jax.ShapeDtypeStruct((n, n), x.dtype)

    if mask_i8 is not None:
        col_max = pl.pallas_call(
            _colmax_masked_kernel, out_shape=stats_shape, grid=(nb,),
            in_specs=[row_block, row_block], out_specs=vec_full,
            compiler_params=params_acc)(x, mask_i8)
        denom = pl.pallas_call(
            _denom_masked_kernel, out_shape=stats_shape, grid=(nb,),
            in_specs=[row_block, row_block, vec_slice], out_specs=vec_full,
            compiler_params=params_acc)(x, mask_i8, col_max)
        return pl.pallas_call(
            _apply_masked_kernel, out_shape=out_shape, grid=(nb,),
            in_specs=[row_block, row_block, vec_slice, vec_slice],
            out_specs=row_block,
            compiler_params=params_par)(x, mask_i8, col_max, denom)

    col_max = pl.pallas_call(
        _colmax_plain_kernel, out_shape=stats_shape, grid=(nb,),
        in_specs=[row_block], out_specs=vec_full,
        compiler_params=params_acc)(x)
    denom = pl.pallas_call(
        _denom_plain_kernel, out_shape=stats_shape, grid=(nb,),
        in_specs=[row_block, vec_slice], out_specs=vec_full,
        compiler_params=params_acc)(x, col_max)
    return pl.pallas_call(
        _apply_plain_kernel, out_shape=out_shape, grid=(nb,),
        in_specs=[row_block, vec_slice, vec_slice], out_specs=row_block,
        compiler_params=params_par)(x, col_max, denom)


def masked_softmax(x, mask=None, *, block_rows=None, force_tiled=False):
    """Pallas implementation of MaskedSoftmax.forward for square (N, N) inputs."""
    if x.ndim != 2 or x.shape[0] != x.shape[1]:
        raise ValueError(
            "MaskedSoftmax semantics (dim-0 reduce + .unsqueeze(-1) broadcast) require a "
            f"square (N, N) input, got {x.shape}")
    if mask is not None and mask.shape != x.shape:
        raise ValueError(f"mask shape {mask.shape} must match x shape {x.shape}")
    n = x.shape[0]

    # ---- resident path: whole problem in VMEM (1 HBM read + 1 write) --------
    mask_bytes = 0 if mask is None else mask.dtype.itemsize * n * n
    resident_bytes = 2 * (2 * x.nbytes + mask_bytes)   # x + out + mask, double-buffered
    if not force_tiled and resident_bytes <= _VMEM_BUDGET:
        full = pl.BlockSpec((n, n), lambda i: (0, 0))
        params = pltpu.CompilerParams(dimension_semantics=("arbitrary",),
                                      vmem_limit_bytes=_VMEM_LIMIT)
        out_shape = jax.ShapeDtypeStruct((n, n), x.dtype)
        if mask is None:
            return pl.pallas_call(_resident_plain_kernel, out_shape=out_shape,
                                  grid=(1,), in_specs=[full], out_specs=full,
                                  compiler_params=params)(x)
        return pl.pallas_call(_resident_masked_kernel, out_shape=out_shape,
                              grid=(1,), in_specs=[full, full], out_specs=full,
                              compiler_params=params)(x, mask)

    # ---- tiled path: row-blocked, pipelined 3-pass (max, denom, apply) ------
    n_pad = ((n + 127) // 128) * 128
    pad = n_pad - n
    need_mask = (mask is not None) or pad > 0

    if need_mask:
        if mask is None:
            mask_i8 = jnp.ones((n, n), dtype=jnp.int8)
        elif mask.dtype in (jnp.int8, jnp.uint8, jnp.bool_):
            mask_i8 = mask
        else:
            mask_i8 = (mask > 0).astype(jnp.int8)     # 1 byte/elem of mask HBM traffic per pass
        if pad:
            mask_i8 = jnp.pad(mask_i8, ((0, pad), (0, pad)))   # padded region fully masked
    else:
        mask_i8 = None

    x_p = jnp.pad(x, ((0, pad), (0, pad))) if pad else x

    per_row = 2 * (2 * x.dtype.itemsize + (1 if mask_i8 is not None else 0)) * n_pad
    tm = _pick_block_rows(n_pad, per_row, block_rows)
    out = _masked_softmax_tiled(x_p, mask_i8, tm)
    if pad:
        out = out[:n, :n]
    return out


# ---------------------------------------------------------------------------
# Pure-JAX reference — literal transcription of the PyTorch forward.
# ---------------------------------------------------------------------------
def _ref_masked_softmax(x, mask=None):
    if mask is not None:
        m = (mask > 0).astype(jnp.float32)
        x_masked = x * m + (1.0 - 1.0 / m)
    else:
        x_masked = x
    x_max = jnp.max(x_masked, axis=0)              # (N,)
    x_exp = jnp.exp(x_masked - x_max[:, None])
    if mask is not None:
        x_exp = x_exp * m
    return x_exp / jnp.sum(x_exp, axis=0)[:, None]


if __name__ == "__main__":
    key = jax.random.PRNGKey(0)

    def run_check(n, use_mask, force_tiled, k):
        kx, km = jax.random.split(k)
        x = jax.random.normal(kx, (n, n), dtype=jnp.float32)
        mask = None
        if use_mask:
            # binary {0,1} float mask; with keep-prob 0.7 no column is fully masked
            mask = (jax.random.uniform(km, (n, n)) > 0.3).astype(jnp.float32)
        out = jax.block_until_ready(masked_softmax(x, mask, force_tiled=force_tiled))
        ref = _ref_masked_softmax(x, mask)
        np.testing.assert_allclose(np.asarray(out), np.asarray(ref),
                                   rtol=1e-5, atol=1e-6)

    keys = jax.random.split(key, 5)
    run_check(256, True, False, keys[0])    # resident path, masked
    run_check(256, False, False, keys[1])   # resident path, unmasked
    run_check(384, True, True, keys[2])     # tiled path (3 row blocks), masked, int8 mask
    run_check(384, False, True, keys[3])    # tiled path, unmasked
    run_check(200, True, True, keys[4])     # tiled path with lane padding (200 -> 256)

    print("KERNEL_OK")
</pallas_src>

<mosaic_0001>
module attributes {stable_mosaic.version = 11 : i64} {
  func.func @_resident_masked_kernel(%arg0: i32, %arg1: memref<256x256xf32, #tpu.memory_space<vmem>>, %arg2: memref<256x256xf32, #tpu.memory_space<vmem>>, %arg3: memref<256x256xf32, #tpu.memory_space<vmem>>) attributes {dimension_semantics = [#tpu.dimension_semantics<arbitrary>], iteration_bounds = array<i64: 1>, scalar_prefetch = 0 : i64, scratch_operands = 0 : i64, tpu.core_type = #tpu.core_type<tc>, window_params = [{pipeline_mode = #tpu.pipeline_mode<synchronous>, transform_indices = @transform_0, window_bounds = array<i64: 256, 256>}, {pipeline_mode = #tpu.pipeline_mode<synchronous>, transform_indices = @transform_1, window_bounds = array<i64: 256, 256>}, {pipeline_mode = #tpu.pipeline_mode<synchronous>, transform_indices = @transform_2, window_bounds = array<i64: 256, 256>}]} {
    %c0 = arith.constant 0 : index
    %c0_0 = arith.constant 0 : index
    %0 = vector.load %arg1[%c0, %c0_0] : memref<256x256xf32, #tpu.memory_space<vmem>>, vector<256x256xf32>
    %c0_1 = arith.constant 0 : index
    %c0_2 = arith.constant 0 : index
    %1 = vector.load %arg2[%c0_1, %c0_2] : memref<256x256xf32, #tpu.memory_space<vmem>>, vector<256x256xf32>
    %cst = arith.constant 0.000000e+00 : f32
    %2 = vector.broadcast %cst : f32 to vector<256x256xf32>
    %3 = arith.cmpf ogt, %1, %2 : vector<256x256xf32>
    %cst_3 = arith.constant 0xFF800000 : f32
    %4 = vector.broadcast %cst_3 : f32 to vector<256x256xf32>
    %5 = arith.select %3, %0, %4 : vector<256x256xi1>, vector<256x256xf32>
    %cst_4 = arith.constant dense<0xFF800000> : vector<256xf32>
    %6 = vector.multi_reduction <maximumf>, %5, %cst_4 [0] : vector<256x256xf32> to vector<256xf32>
    %7 = vector.shape_cast %6 : vector<256xf32> to vector<1x256xf32>
    %8 = tpu.transpose %7, [1, 0] : vector<1x256xf32> -> vector<256x1xf32>
    %9 = vector.broadcast %8 : vector<256x1xf32> to vector<256x256xf32>
    %10 = arith.subf %0, %9 : vector<256x256xf32>
    %11 = math.exp %10 : vector<256x256xf32>
    %cst_5 = arith.constant 0.000000e+00 : f32
    %12 = vector.broadcast %cst_5 : f32 to vector<256x256xf32>
    %13 = arith.select %3, %11, %12 : vector<256x256xi1>, vector<256x256xf32>
    %cst_6 = arith.constant dense<0.000000e+00> : vector<256xf32>
    %14 = vector.multi_reduction <add>, %13, %cst_6 [0] : vector<256x256xf32> to vector<256xf32>
    %15 = vector.shape_cast %14 : vector<256xf32> to vector<1x256xf32>
    %16 = tpu.reciprocal %15 : vector<1x256xf32> -> vector<1x256xf32>
    %17 = tpu.transpose %16, [1, 0] : vector<1x256xf32> -> vector<256x1xf32>
    %18 = vector.broadcast %17 : vector<256x1xf32> to vector<256x256xf32>
    %19 = arith.mulf %13, %18 : vector<256x256xf32>
    %c0_7 = arith.constant 0 : index
    %c0_8 = arith.constant 0 : index
    %20 = vector.load %arg3[%c0_7, %c0_8] : memref<256x256xf32, #tpu.memory_space<vmem>>, vector<256x256xf32>
    tpu.vector_store %arg3[%c0_7, %c0_8], %19 {strides = array<i32>} : memref<256x256xf32, #tpu.memory_space<vmem>>, vector<256x256xf32>,
    return
  }
  func.func @transform_0(%arg0: i32) -> (i32, i32) {
    %c0_i32 = arith.constant 0 : i32
    %c0_i32_0 = arith.constant 0 : i32
    %c0_i32_1 = arith.constant 0 : i32
    return %c0_i32, %c0_i32_0 : i32, i32
  }
  func.func @transform_1(%arg0: i32) -> (i32, i32) {
    %c0_i32 = arith.constant 0 : i32
    %c0_i32_0 = arith.constant 0 : i32
    %c0_i32_1 = arith.constant 0 : i32
    return %c0_i32, %c0_i32_0 : i32, i32
  }
  func.func @transform_2(%arg0: i32) -> (i32, i32) {
    %c0_i32 = arith.constant 0 : i32
    %c0_i32_0 = arith.constant 0 : i32
    %c0_i32_1 = arith.constant 0 : i32
    return %c0_i32, %c0_i32_0 : i32, i32
  }
}

</mosaic_0001>

<bundles_post_ra>
// kernel: tpu_custom_call.1
= control target key start
LH: loop header
LB: loop body
LE: loop exit
PB: predicated region body
PF: predicated region fallthrough
CT: control target
= control target key end

     0   :  { %7 = vsyncpa [#allocation3], 0  ;;  %s2613_s0 = inlined_call_operand.hbm [shape: f32[256,256], index: 0, kind: input, shape index: {}]   ;;  %s2614_s1 = inlined_call_operand.hbm [shape: f32[256,256], index: 1, kind: input, shape index: {}]   ;;  %s2615_s2 = inlined_call_operand.hbm [shape: f32[256,256], index: 2, kind: output, shape index: {}]  }
   0x1   :  { %8 = vsyncpa [#allocation6], 0 }
   0x2   :  { %9 = vsyncpa [#allocation4], 0  ;;  %s14_s11 = sshll.u32 %s2613_s0, 4  ;;  %s1561_s12 = smov [#allocation2]   ;;  %s15_s11 = int_to_ptr.hbm [resolvable:$true] %s14_s11 }
   0x3   :  { %s16_s13 = sshll.u32 %s1561_s12, 4  ;;  %s27_s16 = sshll.u32 %s2614_s1, 4  ;;  %s17_s13 = int_to_ptr.vmem [resolvable:$true] %s16_s13  ;;  %s28_s16 = int_to_ptr.hbm [resolvable:$true] %s27_s16 }
   0x4   :  { %s1562_s17 = smov 256   ;;  %s1563_s18 = smov 16  }
   0x5   :  { %22 = dma.hbm_to_vmem [thread:$0]  %s15_s11, 8192, %s17_s13, [#allocation3], %s1562_s17, %s1562_s17, %s1563_s18  }
   0x6   :  { %s1564_s19 = smov [#allocation5]  }
   0x7   :  { %s29_s20 = sshll.u32 %s1564_s19, 4  ;;  %s30_s20 = int_to_ptr.vmem [resolvable:$true] %s29_s20 }
   0x8   :  { %35 = dma.hbm_to_vmem [thread:$0]  %s28_s16, 8192, %s30_s20, [#allocation6], %s1562_s17, %s1562_s17, %s1563_s18  }
   0x9   :  { %1555 = dma.done.wait [#allocation3], 8192  }
   0xa   :  { %1556 = vsyncadd [#allocation3], 4294959104 }
   0xb   :  { %1557 = dma.done.wait [#allocation6], 8192  }
   0xc   :  { %1558 = vsyncadd [#allocation6], 4294959104  ;;  %v1594_v0 = vld [vmem:[#allocation5] sm:$0xff]  ;;  %v1596_v1 = vld [vmem:[#allocation5 + $0x10] sm:$0xff]  ;;  %s1566_s0 = smov [#allocation7]   ;;  %s1314_s23 = sshll.u32 %s2615_s2, 4  ;;  %s1315_s23 = int_to_ptr.hbm [resolvable:$true] %s1314_s23 }
   0xd   :  { %v1598_v2 = vld [vmem:[#allocation5 + $0x20] sm:$0xff]  ;;  %v1600_v3 = vld [vmem:[#allocation5 + $0x30] sm:$0xff]  ;;  %vm172_vm0 = vcmp.gt.f32.partialorder %v1594_v0, 0.0  ;;  %vm174_vm1 = vcmp.gt.f32.partialorder %v1596_v1, 0.0  ;;  %s1312_s1 = sshll.u32 %s1566_s0, 4  ;;  %s1313_s1 = int_to_ptr.vmem [resolvable:$true] %s1312_s1 }
   0xe   :  { %v1602_v4 = vld [vmem:[#allocation2] sm:$0xff]  ;;  %v1604_v5 = vld [vmem:[#allocation2 + $0x10] sm:$0xff]  ;;  %vm176_vm2 = vcmp.gt.f32.partialorder %v1598_v2, 0.0  ;;  %vm178_vm3 = vcmp.gt.f32.partialorder %v1600_v3, 0.0 }
   0xf   :  { %v1606_v6 = vld [vmem:[#allocation5 + $0x40] sm:$0xff]  ;;  %v1608_v7 = vld [vmem:[#allocation5 + $0x50] sm:$0xff]  ;;  %v236_v16 = vsel %vm172_vm0, %v1602_v4, -inf  ;;  %v238_v17 = vsel %vm174_vm1, %v1604_v5, -inf }
  0x10   :  { %2768 = vst [vmem:[#allocation11_spill] sm:$0xff] %v1608_v7  ;;  %v1610_v8 = vld [vmem:[#allocation2 + $0x20] sm:$0xff]  ;;  %v1612_v9 = vld [vmem:[#allocation2 + $0x30] sm:$0xff]  ;;  %vm180_vm4 = vcmp.gt.f32.partialorder %v1606_v6, 0.0  ;;  %vm182_vm5 = vcmp.gt.f32.partialorder %v1608_v7, 0.0 }
  0x11   :  { %v1618_v10 = vld [vmem:[#allocation5 + $0x60] sm:$0xff]  ;;  %v1620_v11 = vld [vmem:[#allocation5 + $0x70] sm:$0xff]  ;;  %v240_v18 = vsel %vm176_vm2, %v1610_v8, -inf  ;;  %v242_v19 = vsel %vm178_vm3, %v1612_v9, -inf }
  0x12   :  { %2769 = vst [vmem:[#allocation12_spill] sm:$0xff] %v1618_v10  ;;  %v1622_v12 = vld [vmem:[#allocation2 + $0x40] sm:$0xff]  ;;  %v1624_v13 = vld [vmem:[#allocation2 + $0x50] sm:$0xff]  ;;  %vm2656_vm6 = vcmp.gt.f32.partialorder %v1618_v10, 0.0  ;;  %vm2655_vm7 = vcmp.gt.f32.partialorder %v1620_v11, 0.0  ;;  %v300_v28 = vmax.f32 %v236_v16, %v240_v18  ;;  %v301_v29 = vmax.f32 %v238_v17, %v242_v19 }
  0x13   :  { %2770 = vst [vmem:[#allocation13_spill] sm:$0xff] %v1620_v11  ;;  %v1628_v14 = vld [vmem:[#allocation5 + $0x80] sm:$0xff]  ;;  %v1630_v15 = vld [vmem:[#allocation5 + $0x90] sm:$0xff]  ;;  %v244_v24 = vsel %vm180_vm4, %v1622_v12, -inf  ;;  %v246_v25 = vsel %vm182_vm5, %v1624_v13, -inf  ;;  %v1981_v11 = vld [vmem:[#allocation5 + $0x168] sm:$0xff] }
  0x14   :  { %2771 = vst [vmem:[#allocation14_spill] sm:$0xff] %v1628_v14  ;;  %v1644_v20 = vld [vmem:[#allocation2 + $0x60] sm:$0xff]  ;;  %v1646_v21 = vld [vmem:[#allocation2 + $0x70] sm:$0xff]  ;;  %vm2650_vm8 = vcmp.gt.f32.partialorder %v1628_v14, 0.0  ;;  %vm2649_vm9 = vcmp.gt.f32.partialorder %v1630_v15, 0.0  ;;  %v302_v36 = vmax.f32 %v300_v28, %v244_v24  ;;  %v303_v37 = vmax.f32 %v301_v29, %v246_v25  ;;  %v1949_v14 = vld [vmem:[#allocation5 + $0x128] sm:$0xff] }
  0x15   :  { %2772 = vst [vmem:[#allocation15_spill] sm:$0xff] %v1630_v15  ;;  %v1650_v22 = vld [vmem:[#allocation5 + $0xa0] sm:$0xff]  ;;  %v1652_v23 = vld [vmem:[#allocation5 + $0xb0] sm:$0xff]  ;;  %v248_v32 = vsel %vm2656_vm6, %v1644_v20, -inf  ;;  %v250_v33 = vsel %vm2655_vm7, %v1646_v21, -inf  ;;  %v1917_v15 = vld [vmem:[#allocation5 + $0xe8] sm:$0xff] }
  0x16   :  { %2773 = vst [vmem:[#allocation16_spill] sm:$0xff] %v1650_v22  ;;  %v1660_v26 = vld [vmem:[#allocation2 + $0x80] sm:$0xff]  ;;  %v1662_v27 = vld [vmem:[#allocation2 + $0x90] sm:$0xff]  ;;  %vm2617_vm10 = vcmp.gt.f32.partialorder %v1650_v22, 0.0  ;;  %vm2616_vm11 = vcmp.gt.f32.partialorder %v1652_v23, 0.0  ;;  %v304_v44 = vmax.f32 %v302_v36, %v248_v32  ;;  %v305_v45 = vmax.f32 %v303_v37, %v250_v33  ;;  %v1913_v22 = vld [vmem:[#allocation2 + $0xd8] sm:$0xff] }
  0x17   :  { %2774 = vst [vmem:[#allocation17_spill] sm:$0xff] %v1652_v23  ;;  %v1666_v30 = vld [vmem:[#allocation5 + $0xc0] sm:$0xff]  ;;  %v1668_v31 = vld [vmem:[#allocation5 + $0xd0] sm:$0xff]  ;;  %v252_v40 = vsel %vm2650_vm8, %v1660_v26, -inf  ;;  %v254_v41 = vsel %vm2649_vm9, %v1662_v27, -inf }
  0x18   :  { %2775 = vst [vmem:[#allocation18_spill] sm:$0xff] %v1666_v30  ;;  %v1676_v34 = vld [vmem:[#allocation2 + $0xa0] sm:$0xff]  ;;  %v1678_v35 = vld [vmem:[#allocation2 + $0xb0] sm:$0xff]  ;;  %vm2619_vm12 = vcmp.gt.f32.partialorder %v1666_v30, 0.0  ;;  %vm2618_vm13 = vcmp.gt.f32.partialorder %v1668_v31, 0.0  ;;  %v306_v52 = vmax.f32 %v304_v44, %v252_v40  ;;  %v307_v53 = vmax.f32 %v305_v45, %v254_v41  ;;  %v1901_v30 = vld [vmem:[#allocation5 + $0xc8] sm:$0xff] }
  0x19   :  { %2776 = vst [vmem:[#allocation19_spill] sm:$0xff] %v1668_v31  ;;  %v1682_v38 = vld [vmem:[#allocation5 + $0xe0] sm:$0xff]  ;;  %v1684_v39 = vld [vmem:[#allocation5 + $0xf0] sm:$0xff]  ;;  %v256_v48 = vsel %vm2617_vm10, %v1676_v34, -inf  ;;  %v258_v49 = vsel %vm2616_vm11, %v1678_v35, -inf  ;;  %v1895_v31 = vld [vmem:[#allocation2 + $0xa8] sm:$0xff] }
  0x1a   :  { %2777 = vst [vmem:[#allocation20_spill] sm:$0xff] %v1678_v35  ;;  %v1692_v42 = vld [vmem:[#allocation2 + $0xc0] sm:$0xff]  ;;  %v70_v43 = vld [vmem:[#allocation2 + $0xd0] sm:$0xff]  ;;  %vm2621_vm14 = vcmp.gt.f32.partialorder %v1682_v38, 0.0  ;;  %vm2620_vm15 = vcmp.gt.f32.partialorder %v1684_v39, 0.0  ;;  %v308_v60 = vmax.f32 %v306_v52, %v256_v48  ;;  %v309_v61 = vmax.f32 %v307_v53, %v258_v49 }
  0x1b   :  { %2778 = vst [vmem:[#allocation21_spill] sm:$0xff] %v1682_v38  ;;  %v1696_v46 = vld [vmem:[#allocation5 + $0x100] sm:$0xff]  ;;  %v1698_v47 = vld [vmem:[#allocation5 + $0x110] sm:$0xff]  ;;  %v260_v56 = vsel %vm2619_vm12, %v1692_v42, -inf  ;;  %v262_v57 = vsel %vm2618_vm13, %v70_v43, -inf  ;;  %v1885_v38 = vld [vmem:[#allocation5 + $0xa8] sm:$0xff] }
  0x1c   :  { %2779 = vst [vmem:[#allocation22_spill] sm:$0xff] %v1684_v39  ;;  %v72_v50 = vld [vmem:[#allocation2 + $0xe0] sm:$0xff]  ;;  %v74_v51 = vld [vmem:[#allocation2 + $0xf0] sm:$0xff]  ;;  %vm2622_vm11 = vcmp.gt.f32.partialorder %v1696_v46, 0.0  ;;  %vm2623_vm10 = vcmp.gt.f32.partialorder %v1698_v47, 0.0  ;;  %v310_v24 = vmax.f32 %v308_v60, %v260_v56  ;;  %v311_v25 = vmax.f32 %v309_v61, %v262_v57  ;;  %v1879_v39 = vld [vmem:[#allocation2 + $0x88] sm:$0xff] }
  0x1d   :  { %2780 = vst [vmem:[#allocation23_spill] sm:$0xff] %v1692_v42  ;;  %v1708_v54 = vld [vmem:[#allocation5 + $0x120] sm:$0xff]  ;;  %v1710_v55 = vld [vmem:[#allocation5 + $0x130] sm:$0xff]  ;;  %v264_v16 = vsel %vm2621_vm14, %v72_v50, -inf  ;;  %v266_v17 = vsel %vm2620_vm15, %v74_v51, -inf }
  0x1e   :  { %2781 = vst [vmem:[#allocation24_spill] sm:$0xff] %v1696_v46  ;;  %v1717_v58 = vld [vmem:[#allocation2 + $0x100] sm:$0xff]  ;;  %v1719_v59 = vld [vmem:[#allocation2 + $0x110] sm:$0xff]  ;;  %vm2624_vm13 = vcmp.gt.f32.partialorder %v1708_v54, 0.0  ;;  %vm2625_vm12 = vcmp.gt.f32.partialorder %v1710_v55, 0.0  ;;  %v312_v40 = vmax.f32 %v310_v24, %v264_v16  ;;  %v313_v41 = vmax.f32 %v311_v25, %v266_v17 }
  0x1f   :  { %2782 = vst [vmem:[#allocation25_spill] sm:$0xff] %v1698_v47  ;;  %v1723_v62 = vld [vmem:[#allocation5 + $0x140] sm:$0xff]  ;;  %v1725_v63 = vld [vmem:[#allocation5 + $0x150] sm:$0xff]  ;;  %v268_v32 = vsel %vm2622_vm11, %v1717_v58, -inf  ;;  %v270_v33 = vsel %vm2623_vm10, %v1719_v59, -inf  ;;  %v1897_v47 = vld [vmem:[#allocation2 + $0xb8] sm:$0xff] }
  0x20   :  { %2783 = vst [vmem:[#allocation26_spill] sm:$0xff] %v1708_v54  ;;  %v1731_v18 = vld [vmem:[#allocation2 + $0x120] sm:$0xff]  ;;  %v1733_v19 = vld [vmem:[#allocation2 + $0x130] sm:$0xff]  ;;  %vm2627_vm15 = vcmp.gt.f32.partialorder %v1723_v62, 0.0  ;;  %vm2628_vm14 = vcmp.gt.f32.partialorder %v1725_v63, 0.0  ;;  %v314_v51 = vmax.f32 %v312_v40, %v268_v32  ;;  %v315_v52 = vmax.f32 %v313_v41, %v270_v33 }
  0x21   :  { %2784 = vst [vmem:[#allocation27_spill] sm:$0xff] %v1710_v55  ;;  %v1737_v28 = vld [vmem:[#allocation5 + $0x160] sm:$0xff]  ;;  %v1739_v29 = vld [vmem:[#allocation5 + $0x170] sm:$0xff]  ;;  %v272_v45 = vsel %vm2624_vm13, %v1731_v18, -inf  ;;  %v274_v48 = vsel %vm2625_vm12, %v1733_v19, -inf  ;;  %v1881_v55 = vld [vmem:[#allocation2 + $0x98] sm:$0xff] }
  0x22   :  { %2785 = vst [vmem:[#allocation28_spill] sm:$0xff] %v1723_v62  ;;  %v1747_v36 = vld [vmem:[#allocation2 + $0x140] sm:$0xff]  ;;  %v1749_v37 = vld [vmem:[#allocation2 + $0x150] sm:$0xff]  ;;  %vm2631_vm11 = vcmp.gt.f32.partialorder %v1737_v28, 0.0  ;;  %vm2632_vm10 = vcmp.gt.f32.partialorder %v1739_v29, 0.0  ;;  %v316_v17 = vmax.f32 %v314_v51, %v272_v45  ;;  %v317_v24 = vmax.f32 %v315_v52, %v274_v48 }
  0x23   :  { %2786 = vst [vmem:[#allocation29_spill] sm:$0xff] %v1725_v63  ;;  %v1753_v43 = vld [vmem:[#allocation5 + $0x180] sm:$0xff]  ;;  %v1755_v44 = vld [vmem:[#allocation5 + $0x190] sm:$0xff]  ;;  %v276_v57 = vsel %vm2627_vm15, %v1747_v36, -inf  ;;  %v278_v60 = vsel %vm2628_vm14, %v1749_v37, -inf }
  0x24   :  { %2787 = vst [vmem:[#allocation30_spill] sm:$0xff] %v1737_v28  ;;  %v88_v49 = vld [vmem:[#allocation2 + $0x160] sm:$0xff]  ;;  %v90_v50 = vld [vmem:[#allocation2 + $0x170] sm:$0xff]  ;;  %vm2635_vm13 = vcmp.gt.f32.partialorder %v1753_v43, 0.0  ;;  %vm2636_vm12 = vcmp.gt.f32.partialorder %v1755_v44, 0.0  ;;  %v318_v63 = vmax.f32 %v316_v17, %v276_v57  ;;  %v319_v54 = vmax.f32 %v317_v24, %v278_v60 }
  0x25   :  { %2788 = vst [vmem:[#allocation31_spill] sm:$0xff] %v1739_v29  ;;  %v1765_v53 = vld [vmem:[#allocation5 + $0x1a0] sm:$0xff]  ;;  %v1767_v56 = vld [vmem:[#allocation5 + $0x1b0] sm:$0xff]  ;;  %v280_v33 = vsel %vm2631_vm11, %v88_v49, -inf  ;;  %v282_v40 = vsel %vm2632_vm10, %v90_v50, -inf }
  0x26   :  { %2789 = vst [vmem:[#allocation32_spill] sm:$0xff] %v1747_v36  ;;  %v92_v61 = vld [vmem:[#allocation2 + $0x180] sm:$0xff]  ;;  %v94_v16 = vld [vmem:[#allocation2 + $0x190] sm:$0xff]  ;;  %vm2648_vm15 = vcmp.gt.f32.partialorder %v1765_v53, 0.0  ;;  %vm2647_vm14 = vcmp.gt.f32.partialorder %v1767_v56, 0.0  ;;  %v320_v28 = vmax.f32 %v318_v63, %v280_v33  ;;  %v321_v29 = vmax.f32 %v319_v54, %v282_v40  ;;  %v1929_v36 = vld [vmem:[#allocation2 + $0xf8] sm:$0xff] }
  0x27   :  { %2790 = vst [vmem:[#allocation33_spill] sm:$0xff] %v1749_v37  ;;  %v1777_v25 = vld [vmem:[#allocation5 + $0x1c0] sm:$0xff]  ;;  %v1779_v32 = vld [vmem:[#allocation5 + $0x1d0] sm:$0xff]  ;;  %v284_v51 = vsel %vm2635_vm13, %v92_v61, -inf  ;;  %v286_v49 = vsel %vm2636_vm12, %v94_v16, -inf  ;;  %v1993_v37 = vld [vmem:[#allocation2 + $0x178] sm:$0xff] }
  0x28   :  { %2791 = vst [vmem:[#allocation34_spill] sm:$0xff] %v1753_v43  ;;  %v96_v41 = vld [vmem:[#allocation2 + $0x1a0] sm:$0xff]  ;;  %v98_v62 = vld [vmem:[#allocation2 + $0x1b0] sm:$0xff]  ;;  %vm2646_vm11 = vcmp.gt.f32.partialorder %v1777_v25, 0.0  ;;  %vm2645_vm10 = vcmp.gt.f32.partialorder %v1779_v32, 0.0  ;;  %v322_v61 = vmax.f32 %v320_v28, %v284_v51  ;;  %v323_v16 = vmax.f32 %v321_v29, %v286_v49 }
  0x29   :  { %2792 = vst [vmem:[#allocation35_spill] sm:$0xff] %v1755_v44  ;;  %v1787_v45 = vld [vmem:[#allocation5 + $0x1e0] sm:$0xff]  ;;  %v1789_v48 = vld [vmem:[#allocation5 + $0x1f0] sm:$0xff]  ;;  %v288_v57 = vsel %vm2648_vm15, %v96_v41, -inf  ;;  %v290_v60 = vsel %vm2647_vm14, %v98_v62, -inf }
  0x2a   :  { %2793 = vst [vmem:[#allocation36_spill] sm:$0xff] %v1765_v53  ;;  %v100_v52 = vld [vmem:[#allocation2 + $0x1c0] sm:$0xff]  ;;  %v102_v50 = vld [vmem:[#allocation2 + $0x1d0] sm:$0xff]  ;;  %vm2644_vm13 = vcmp.gt.f32.partialorder %v1787_v45, 0.0  ;;  %vm2643_vm12 = vcmp.gt.f32.partialorder %v1789_v48, 0.0  ;;  %v324_v63 = vmax.f32 %v322_v61, %v288_v57  ;;  %v325_v33 = vmax.f32 %v323_v16, %v290_v60  ;;  %v1813_v57 = vld [vmem:[#allocation5 + $0x18] sm:$0xff] }
  0x2b   :  { %2794 = vst [vmem:[#allocation37_spill] sm:$0xff] %v1767_v56  ;;  %v104_v17 = vld [vmem:[#allocation2 + $0x1e0] sm:$0xff]  ;;  %v106_v24 = vld [vmem:[#allocation2 + $0x1f0] sm:$0xff]  ;;  %v292_v44 = vsel %vm2646_vm11, %v100_v52, -inf  ;;  %v294_v54 = vsel %vm2645_vm10, %v102_v50, -inf  ;;  %v1811_v50 = vld [vmem:[#allocation5 + $0x8] sm:$0xff] }
  0x2c   :  { %2795 = vst [vmem:[#allocation38_spill] sm:$0xff] %v1777_v25  ;;  %v296_v40 = vsel %vm2644_vm13, %v104_v17, -inf  ;;  %v298_v62 = vsel %vm2643_vm12, %v106_v24, -inf  ;;  %v326_v41 = vmax.f32 %v324_v63, %v292_v44  ;;  %v327_v56 = vmax.f32 %v325_v33, %v294_v54  ;;  %v1815_v60 = vld [vmem:[#allocation5 + $0x28] sm:$0xff]  ;;  %v1817_v17 = vld [vmem:[#allocation5 + $0x38] sm:$0xff] }
  0x2d   :  { %2796 = vst [vmem:[#allocation39_spill] sm:$0xff] %v1779_v32  ;;  %v1819_v44 = vld [vmem:[#allocation2 + $0x8] sm:$0xff]  ;;  %v1821_v24 = vld [vmem:[#allocation2 + $0x18] sm:$0xff]  ;;  %vm173_vm12 = vcmp.gt.f32.partialorder %v1811_v50, 0.0  ;;  %vm175_vm13 = vcmp.gt.f32.partialorder %v1813_v57, 0.0  ;;  %vm177_vm10 = vcmp.gt.f32.partialorder %v1815_v60, 0.0 }
  0x2e   :  { %2797 = vst [vmem:[#allocation40_spill] sm:$0xff] %v1787_v45  ;;  %v328_v53 = vmax.f32 %v326_v41, %v296_v40  ;;  %v329_v43 = vmax.f32 %v327_v56, %v298_v62  ;;  %vm179_vm11 = vcmp.gt.f32.partialorder %v1817_v17, 0.0  ;;  %v1831_v56 = vld [vmem:[#allocation5 + $0x48] sm:$0xff]  ;;  %v239_v61 = vsel %vm175_vm13, %v1821_v24, -inf  ;;  %v1849_v33 = vld [vmem:[#allocation2 + $0x58] sm:$0xff] }
  0x2f   :  { %2798 = vst [vmem:[#allocation41_spill] sm:$0xff] %v1789_v48  ;;  %v1847_v63 = vld [vmem:[#allocation2 + $0x48] sm:$0xff]  ;;  %vm181_vm14 = vcmp.gt.f32.partialorder %v1831_v56, 0.0  ;;  %v1855_v62 = vld [vmem:[#allocation5 + $0x78] sm:$0xff] }
  0x30   :  { %v330_v28 = vmax.f32 %v328_v53, %v329_v43  ;;  %v1823_v43 = vld [vmem:[#allocation2 + $0x28] sm:$0xff]  ;;  %v1825_v53 = vld [vmem:[#allocation2 + $0x38] sm:$0xff]  ;;  %2801 = vst [vmem:[#allocation44_spill] sm:$0xff] %v1855_v62  ;;  %vm2661_vm8 = vcmp.gt.f32.partialorder %v1855_v62, 0.0 }
  0x31   :  { %v241_v16 = vsel %vm177_vm10, %v1823_v43, -inf  ;;  %v243_v54 = vsel %vm179_vm11, %v1825_v53, -inf  ;;  %v1853_v40 = vld [vmem:[#allocation5 + $0x68] sm:$0xff]  ;;  %2804 = vst [vmem:[#allocation47_spill] sm:$0xff] %v1885_v38  ;;  %v1977_v62 = vld [vmem:[#allocation2 + $0x158] sm:$0xff] }
  0x32   :  { %v331_v29 = vrot.slane %v330_v28, 4  ;;  %2800 = vst [vmem:[#allocation43_spill] sm:$0xff] %v1853_v40  ;;  %vm2662_vm9 = vcmp.gt.f32.partialorder %v1853_v40, 0.0  ;;  %v1869_v48 = vld [vmem:[#allocation5 + $0x88] sm:$0xff] }
  0x33   :  { %2802 = vst [vmem:[#allocation45_spill] sm:$0xff] %v1869_v48  ;;  %vm2668_vm7 = vcmp.gt.f32.partialorder %v1869_v48, 0.0  ;;  %v1933_v48 = vld [vmem:[#allocation5 + $0x108] sm:$0xff] }
  0x34   :  { %v332_v51 = vmax.f32 %v330_v28, %v331_v29  ;;  %v338_v28 = vmax.f32 %v239_v61, %v243_v54  ;;  %v245_v29 = vsel %vm181_vm14, %v1847_v63, -inf  ;;  %2806 = vst [vmem:[#allocation49_spill] sm:$0xff] %v1895_v31 }
  0x35   :  { %2807 = vst [vmem:[#allocation50_spill] sm:$0xff] %v1897_v47 }
  0x36   :  { %v333_v49 = vrot.slane %v332_v51, 2  ;;  %2808 = vst [vmem:[#allocation51_spill] sm:$0xff] %v1901_v30 }
  0x37   :  { %2811 = vst [vmem:[#allocation54_spill] sm:$0xff] %v1913_v22 }
  0x38   :  { %v334_v52 = vmax.f32 %v332_v51, %v333_v49  ;;  %v1863_v49 = vld [vmem:[#allocation2 + $0x68] sm:$0xff]  ;;  %2812 = vst [vmem:[#allocation55_spill] sm:$0xff] %v1917_v15 }
  0x39   :  { %v249_v54 = vsel %vm2662_vm9, %v1863_v49, -inf  ;;  %2815 = vst [vmem:[#allocation58_spill] sm:$0xff] %v1929_v36 }
  0x3a   :  { %v335_v25 = vrot.slane %v334_v52, 1  ;;  %2816 = vst [vmem:[#allocation59_spill] sm:$0xff] %v1933_v48 }
  0x3b   :  { %2818 = vst [vmem:[#allocation61_spill] sm:$0xff] %v1949_v14 }
  0x3c   :  { %v336_v32 = vmax.f32 %v334_v52, %v335_v25  ;;  %v1833_v25 = vld [vmem:[#allocation5 + $0x58] sm:$0xff]  ;;  %2824 = vst [vmem:[#allocation67_spill] sm:$0xff] %v1977_v62 }
  0x3d   :  { %2799 = vst [vmem:[#allocation42_spill] sm:$0xff] %v1833_v25  ;;  %vm183_vm15 = vcmp.gt.f32.partialorder %v1833_v25, 0.0  ;;  %v1865_v52 = vld [vmem:[#allocation2 + $0x78] sm:$0xff] }
  0x3e   :  { %374 = vxpose.xlu0.b32.start.end [1/1] (short) %v336_v32, 128  ;;  %v237_v32 = vsel %vm173_vm12, %v1819_v44, -inf  ;;  %v247_v51 = vsel %vm183_vm15, %v1849_v33, -inf  ;;  %v251_v45 = vsel %vm2661_vm8, %v1865_v52, -inf  ;;  %vm2674_vm8 = vcmp.gt.f32.partialorder %v1885_v38, 0.0  ;;  %v1927_v38 = vld [vmem:[#allocation2 + $0xe8] sm:$0xff]  ;;  %2825 = vst [vmem:[#allocation68_spill] sm:$0xff] %v1981_v11 }
  0x3f   :  { %v337_v41 = vmax.f32 %v237_v32, %v241_v16  ;;  %v1871_v32 = vld [vmem:[#allocation5 + $0x98] sm:$0xff]  ;;  %v340_v16 = vmax.f32 %v338_v28, %v247_v51  ;;  %v253_v51 = vsel %vm2668_vm7, %v1879_v39, -inf  ;;  %2814 = vst [vmem:[#allocation57_spill] sm:$0xff] %v1927_v38 }
  0x40   :  { %2803 = vst [vmem:[#allocation46_spill] sm:$0xff] %v1871_v32  ;;  %vm2667_vm6 = vcmp.gt.f32.partialorder %v1871_v32, 0.0  ;;  %v1911_v32 = vld [vmem:[#allocation2 + $0xc8] sm:$0xff] }
  0x41   :  { %v339_v61 = vmax.f32 %v337_v41, %v245_v29  ;;  %v1887_v41 = vld [vmem:[#allocation5 + $0xb8] sm:$0xff]  ;;  %v342_v29 = vmax.f32 %v340_v16, %v251_v45  ;;  %v255_v46 = vsel %vm2667_vm6, %v1881_v55, -inf  ;;  %2810 = vst [vmem:[#allocation53_spill] sm:$0xff] %v1911_v32  ;;  %vm2680_vm6 = vcmp.gt.f32.partialorder %v1901_v30, 0.0  ;;  %v1943_v30 = vld [vmem:[#allocation2 + $0x108] sm:$0xff] }
  0x42   :  { %2805 = vst [vmem:[#allocation48_spill] sm:$0xff] %v1887_v41  ;;  %vm2673_vm9 = vcmp.gt.f32.partialorder %v1887_v41, 0.0 }
  0x43   :  { %v341_v28 = vmax.f32 %v339_v61, %v249_v54  ;;  %v1903_v61 = vld [vmem:[#allocation5 + $0xd8] sm:$0xff]  ;;  %v344_v16 = vmax.f32 %v342_v29, %v255_v46  ;;  %v257_v54 = vsel %vm2674_vm8, %v1895_v31, -inf  ;;  %v259_v23 = vsel %vm2673_vm9, %v1897_v47, -inf  ;;  %2828 = vst [vmem:[#allocation71_spill] sm:$0xff] %v1993_v37 }
  0x44   :  { %2809 = vst [vmem:[#allocation52_spill] sm:$0xff] %v1903_v61  ;;  %vm2679_vm7 = vcmp.gt.f32.partialorder %v1903_v61, 0.0  ;;  %vm2686_vm9 = vcmp.gt.f32.partialorder %v1917_v15, 0.0  ;;  %v1959_v15 = vld [vmem:[#allocation2 + $0x128] sm:$0xff] }
  0x45   :  { %v343_v45 = vmax.f32 %v341_v28, %v253_v51  ;;  %v1919_v28 = vld [vmem:[#allocation5 + $0xf8] sm:$0xff]  ;;  %v346_v29 = vmax.f32 %v344_v16, %v259_v23  ;;  %v261_v51 = vsel %vm2680_vm6, %v1911_v32, -inf  ;;  %v263_v41 = vsel %vm2679_vm7, %v1913_v22, -inf  ;;  %2820 = vst [vmem:[#allocation63_spill] sm:$0xff] %v1959_v15  ;;  %v1997_v32 = vld [vmem:[#allocation5 + $0x188] sm:$0xff] }
  0x46   :  { %2813 = vst [vmem:[#allocation56_spill] sm:$0xff] %v1919_v28  ;;  %vm2685_vm8 = vcmp.gt.f32.partialorder %v1919_v28, 0.0  ;;  %v1945_v22 = vld [vmem:[#allocation2 + $0x118] sm:$0xff]  ;;  %vm2691_vm7 = vcmp.gt.f32.partialorder %v1933_v48, 0.0 }
  0x47   :  { %v345_v46 = vmax.f32 %v343_v45, %v257_v54  ;;  %v1935_v45 = vld [vmem:[#allocation5 + $0x118] sm:$0xff]  ;;  %v348_v16 = vmax.f32 %v346_v29, %v263_v41  ;;  %v265_v54 = vsel %vm2686_vm9, %v1927_v38, -inf  ;;  %v267_v61 = vsel %vm2685_vm8, %v1929_v36, -inf  ;;  %v1965_v36 = vld [vmem:[#allocation5 + $0x148] sm:$0xff]  ;;  %2829 = vst [vmem:[#allocation72_spill] sm:$0xff] %v1997_v32 }
  0x48   :  { %2817 = vst [vmem:[#allocation60_spill] sm:$0xff] %v1935_v45  ;;  %vm2692_vm6 = vcmp.gt.f32.partialorder %v1935_v45, 0.0  ;;  %v1961_v38 = vld [vmem:[#allocation2 + $0x138] sm:$0xff]  ;;  %vm2697_vm8 = vcmp.gt.f32.partialorder %v1949_v14, 0.0  ;;  %v1975_v45 = vld [vmem:[#allocation2 + $0x148] sm:$0xff] }
  0x49   :  { %v347_v23 = vmax.f32 %v345_v46, %v261_v51  ;;  %v1951_v46 = vld [vmem:[#allocation5 + $0x138] sm:$0xff]  ;;  %v350_v29 = vmax.f32 %v348_v16, %v267_v61  ;;  %v269_v51 = vsel %vm2691_vm7, %v1943_v30, -inf  ;;  %v271_v28 = vsel %vm2692_vm6, %v1945_v22, -inf  ;;  %2821 = vst [vmem:[#allocation64_spill] sm:$0xff] %v1965_v36 }
  0x4a   :  { %2819 = vst [vmem:[#allocation62_spill] sm:$0xff] %v1951_v46  ;;  %vm2698_vm9 = vcmp.gt.f32.partialorder %v1951_v46, 0.0  ;;  %vm2703_vm7 = vcmp.gt.f32.partialorder %v1965_v36, 0.0  ;;  %v1991_v46 = vld [vmem:[#allocation2 + $0x168] sm:$0xff] }
  0x4b   :  { %v349_v41 = vmax.f32 %v347_v23, %v265_v54  ;;  %v1967_v23 = vld [vmem:[#allocation5 + $0x158] sm:$0xff]  ;;  %v352_v16 = vmax.f32 %v350_v29, %v271_v28  ;;  %v273_v54 = vsel %vm2697_vm8, %v1959_v15, -inf  ;;  %v275_v48 = vsel %vm2698_vm9, %v1961_v38, -inf  ;;  %2823 = vst [vmem:[#allocation66_spill] sm:$0xff] %v1975_v45 }
  0x4c   :  { %2822 = vst [vmem:[#allocation65_spill] sm:$0xff] %v1967_v23  ;;  %vm2704_vm6 = vcmp.gt.f32.partialorder %v1967_v23, 0.0  ;;  %vm2710_vm8 = vcmp.gt.f32.partialorder %v1981_v11, 0.0  ;;  %v2007_v23 = vld [vmem:[#allocation2 + $0x188] sm:$0xff]  ;;  %v2851_v56 = vld [vmem:[#allocation63_spill] sm:$0xff] }
  0x4d   :  { %v351_v61 = vmax.f32 %v349_v41, %v269_v51  ;;  %v1983_v41 = vld [vmem:[#allocation5 + $0x178] sm:$0xff]  ;;  %v354_v29 = vmax.f32 %v352_v16, %v275_v48  ;;  %v277_v51 = vsel %vm2703_vm7, %v1975_v45, -inf  ;;  %v279_v14 = vsel %vm2704_vm6, %v1977_v62, -inf  ;;  %2827 = vst [vmem:[#allocation70_spill] sm:$0xff] %v1991_v46  ;;  %v2013_v62 = vld [vmem:[#allocation5 + $0x1a8] sm:$0xff] }
  0x4e   :  { %2826 = vst [vmem:[#allocation69_spill] sm:$0xff] %v1983_v41  ;;  %vm2709_vm9 = vcmp.gt.f32.partialorder %v1983_v41, 0.0  ;;  %v2009_v45 = vld [vmem:[#allocation2 + $0x198] sm:$0xff]  ;;  %vm2716_vm7 = vcmp.gt.f32.partialorder %v1997_v32, 0.0  ;;  %v2023_v11 = vld [vmem:[#allocation2 + $0x1a8] sm:$0xff] }
  0x4f   :  { %v353_v28 = vmax.f32 %v351_v61, %v273_v54  ;;  %v1999_v61 = vld [vmem:[#allocation5 + $0x198] sm:$0xff]  ;;  %v356_v16 = vmax.f32 %v354_v29, %v279_v14  ;;  %v281_v54 = vsel %vm2710_vm8, %v1991_v46, -inf  ;;  %v283_v36 = vsel %vm2709_vm9, %v1993_v37, -inf  ;;  %2831 = vst [vmem:[#allocation74_spill] sm:$0xff] %v2007_v23  ;;  %v2029_v46 = vld [vmem:[#allocation5 + $0x1c8] sm:$0xff] }
  0x50   :  { %2830 = vst [vmem:[#allocation73_spill] sm:$0xff] %v1999_v61  ;;  %vm2715_vm6 = vcmp.gt.f32.partialorder %v1999_v61, 0.0  ;;  %v2025_v37 = vld [vmem:[#allocation2 + $0x1b8] sm:$0xff]  ;;  %vm2722_vm9 = vcmp.gt.f32.partialorder %v2013_v62, 0.0  ;;  %v2039_v32 = vld [vmem:[#allocation2 + $0x1c8] sm:$0xff] }
  0x51   :  { %v355_v48 = vmax.f32 %v353_v28, %v277_v51  ;;  %2832 = vst [vmem:[#allocation75_spill] sm:$0xff] %v2009_v45  ;;  %v2015_v28 = vld [vmem:[#allocation5 + $0x1b8] sm:$0xff]  ;;  %v358_v29 = vmax.f32 %v356_v16, %v283_v36  ;;  %v285_v51 = vsel %vm2716_vm7, %v2007_v23, -inf  ;;  %v287_v41 = vsel %vm2715_vm6, %v2009_v45, -inf  ;;  %v2045_v23 = vld [vmem:[#allocation5 + $0x1e8] sm:$0xff] }
  0x52   :  { %2833 = vst [vmem:[#allocation76_spill] sm:$0xff] %v2013_v62  ;;  %vm2721_vm8 = vcmp.gt.f32.partialorder %v2015_v28, 0.0  ;;  %v2041_v45 = vld [vmem:[#allocation2 + $0x1d8] sm:$0xff]  ;;  %vm229_vm6 = vcmp.gt.f32.partialorder %v2029_v46, 0.0  ;;  %v2055_v62 = vld [vmem:[#allocation2 + $0x1e8] sm:$0xff] }
  0x53   :  { %2834 = vst [vmem:[#allocation77_spill] sm:$0xff] %v2015_v28  ;;  %v357_v14 = vmax.f32 %v355_v48, %v281_v54  ;;  %v2031_v48 = vld [vmem:[#allocation5 + $0x1d8] sm:$0xff]  ;;  %v360_v16 = vmax.f32 %v358_v29, %v287_v41  ;;  %v289_v54 = vsel %vm2722_vm9, %v2023_v11, -inf  ;;  %v291_v61 = vsel %vm2721_vm8, %v2025_v37, -inf }
  0x54   :  { %2835 = vst [vmem:[#allocation78_spill] sm:$0xff] %v2023_v11  ;;  %vm231_vm7 = vcmp.gt.f32.partialorder %v2031_v48, 0.0  ;;  %vm233_vm8 = vcmp.gt.f32.partialorder %v2045_v23, 0.0 }
  0x55   :  { %2836 = vst [vmem:[#allocation79_spill] sm:$0xff] %v2025_v37  ;;  %v359_v36 = vmax.f32 %v357_v14, %v285_v51  ;;  %v2047_v14 = vld [vmem:[#allocation5 + $0x1f8] sm:$0xff]  ;;  %v362_v29 = vmax.f32 %v360_v16, %v291_v61  ;;  %v293_v51 = vsel %vm229_vm6, %v2039_v32, -inf  ;;  %v295_v28 = vsel %vm231_vm7, %v2041_v45, -inf }
  0x56   :  { %2837 = vst [vmem:[#allocation80_spill] sm:$0xff] %v2029_v46  ;;  %v2057_v37 = vld [vmem:[#allocation2 + $0x1f8] sm:$0xff]  ;;  %vm235_vm9 = vcmp.gt.f32.partialorder %v2047_v14, 0.0  ;;  %v297_v61 = vsel %vm233_vm8, %v2055_v62, -inf }
  0x57   :  { %2838 = vst [vmem:[#allocation81_spill] sm:$0xff] %v2031_v48  ;;  %v361_v41 = vmax.f32 %v359_v36, %v289_v54  ;;  %v364_v42 = vmax.f32 %v362_v29, %v295_v28  ;;  %v299_v36 = vsel %vm235_vm9, %v2057_v37, -inf  ;;  %v1565_v48 = vmov 0  }
  0x58   :  { %2839 = vst [vmem:[#allocation82_spill] sm:$0xff] %v2039_v32  ;;  %1335 = vset.pattern.permute.xlu1 %v1565_v48  ;;  %1336 = vset.pattern.permute.xlu2 %v1565_v48 }
  0x59   :  { %2840 = vst [vmem:[#allocation83_spill] sm:$0xff] %v2041_v45  ;;  %v363_v11 = vmax.f32 %v361_v41, %v293_v51  ;;  %v366_v54 = vmax.f32 %v364_v42, %v299_v36 }
  0x5a   :  { %2841 = vst [vmem:[#allocation84_spill] sm:$0xff] %v2045_v23 }
  0x5b   :  { %2842 = vst [vmem:[#allocation85_spill] sm:$0xff] %v2047_v14  ;;  %v365_v16 = vmax.f32 %v363_v11, %v297_v61 }
  0x5c   :  { %2843 = vst [vmem:[#allocation86_spill] sm:$0xff] %v2055_v62 }
  0x5d   :  { %2844 = vst [vmem:[#allocation87_spill] sm:$0xff] %v2057_v37  ;;  %v367_v46 = vmax.f32 %v365_v16, %v366_v54 }
  0x5f   :  { %v368_v45 = vrot.slane %v367_v46, 4 }
  0x61   :  { %v369_v32 = vmax.f32 %v367_v46, %v368_v45 }
  0x63   :  { %v370_v40 = vrot.slane %v369_v32, 2 }
  0x65   :  { %v371_v47 = vmax.f32 %v369_v32, %v370_v40 }
  0x67   :  { %v372_v41 = vrot.slane %v371_v47, 1 }
  0x69   :  { %v373_v28 = vmax.f32 %v371_v47, %v372_v41 }
  0xbe   :  { %406 = vxpose.xlu0.b32.start.end [1/1] (short) %v373_v28, 128 }
  0xe2   :  { %v390_v29 = vpop.trf.xlu0 }
  0xe3   :  { %440 = vperm.xlu1 %1335, %v390_v29  }
  0xea   :  { %v391_v51 = vpop.trf.xlu0 }
  0xf2   :  { %v392_v23 = vpop.trf.xlu0 }
  0xfa   :  { %v393_v62 = vpop.trf.xlu0 }
 0x102   :  { %v394_v14 = vpop.trf.xlu0 }
 0x10a   :  { %v395_v37 = vpop.trf.xlu0 }
 0x112   :  { %v396_v11 = vpop.trf.xlu0 }
 0x11a   :  { %v397_v42 = vpop.trf.xlu0 }
 0x122   :  { %v398_v61 = vpop.trf.xlu0 }
 0x125   :  { %1337 = vset.pattern.permute.xlu0 %v1565_v48 }
 0x12a   :  { %v399_v36 = vpop.trf.xlu0 }
 0x132   :  { %v400_v16 = vpop.trf.xlu0 }
 0x13a   :  { %v401_v54 = vpop.trf.xlu0 }
 0x142   :  { %v402_v45 = vpop.trf.xlu0 }
 0x14a   :  { %v403_v46 = vpop.trf.xlu0 }
 0x152   :  { %v404_v40 = vpop.trf.xlu0 }
 0x15a   :  { %v405_v32 = vpop.trf.xlu0 }
 0x162   :  { %v422_v47 = vpop.trf.xlu0 }
 0x163   :  { %520 = vperm.xlu1 %1335, %v422_v47  }
 0x16a   :  { %v423_v41 = vpop.trf.xlu0 }
 0x16b   :  { %445 = vperm.xlu1 %1335, %v391_v51   ;;  %525 = vperm.xlu2 %1336, %v423_v41  }
 0x172   :  { %v424_v28 = vpop.trf.xlu0 }
 0x173   :  { %450 = vperm.xlu2 %1336, %v392_v23   ;;  %530 = vperm.xlu1 %1335, %v424_v28  }
 0x17a   :  { %v425_v29 = vpop.trf.xlu0 }
 0x17b   :  { %455 = vperm.xlu2 %1336, %v393_v62   ;;  %460 = vperm.xlu1 %1335, %v394_v14  }
 0x182   :  { %v426_v10 = vpop.trf.xlu0 }
 0x183   :  { %535 = vperm.xlu2 %1336, %v425_v29   ;;  %540 = vperm.xlu1 %1335, %v426_v10  }
 0x18a   :  { %v427_v48 = vpop.trf.xlu0 }
 0x18b   :  { %465 = vperm.xlu2 %1336, %v395_v37   ;;  %470 = vperm.xlu1 %1335, %v396_v11   ;;  %v441_v11 = vpop.permute.xlu1 %440 }
 0x192   :  { %v428_v25 = vpop.trf.xlu0 }
 0x193   :  { %545 = vperm.xlu2 %1336, %v427_v48   ;;  %550 = vperm.xlu1 %1335, %v428_v25  }
 0x19a   :  { %v429_v35 = vpop.trf.xlu0 }
 0x19b   :  { %475 = vperm.xlu2 %1336, %v397_v42   ;;  %480 = vperm.xlu1 %1335, %v398_v61  }
 0x1a2   :  { %v430_v51 = vpop.trf.xlu0 }
 0x1a3   :  { %555 = vperm.xlu2 %1336, %v429_v35   ;;  %560 = vperm.xlu1 %1335, %v430_v51  }
 0x1aa   :  { %v431_v23 = vpop.trf.xlu0 }
 0x1ab   :  { %485 = vperm.xlu2 %1336, %v399_v36   ;;  %490 = vperm.xlu1 %1335, %v400_v16  }
 0x1b2   :  { %v432_v62 = vpop.trf.xlu0 }
 0x1b3   :  { %565 = vperm.xlu2 %1336, %v431_v23   ;;  %570 = vperm.xlu1 %1335, %v432_v62   ;;  %v598_v62 = vsub.f32 %v1602_v4, %v441_v11 }
 0x1ba   :  { %v433_v14 = vpop.trf.xlu0 }
 0x1bb   :  { %495 = vperm.xlu2 %1336, %v401_v54   ;;  %500 = vperm.xlu1 %1335, %v402_v45  }
 0x1c2   :  { %v434_v10 = vpop.trf.xlu0 }
 0x1c3   :  { %575 = vperm.xlu2 %1336, %v433_v14   ;;  %580 = vperm.xlu1 %1335, %v434_v10  }
 0x1c5   :  { %v526_v37 = vpop.permute.xlu2 %525 }
 0x1ca   :  { %v435_v25 = vpop.trf.xlu0 }
 0x1cb   :  { %505 = vperm.xlu2 %1336, %v403_v46   ;;  %510 = vperm.xlu1 %1335, %v404_v40  }
 0x1cd   :  { %v451_v42 = vpop.permute.xlu2 %450 }
 0x1ce   :  { %v602_v7 = vsub.f32 %v1610_v8, %v451_v42  ;;  %v603_v31 = vsub.f32 %v1823_v43, %v451_v42 }
 0x1d2   :  { %v436_v35 = vpop.trf.xlu0 }
 0x1d3   :  { %585 = vperm.xlu2 %1336, %v435_v25   ;;  %590 = vperm.xlu1 %1335, %v436_v35  }
 0x1d5   :  { %v2067_v61 = vpop.permute.xlu1 %520  ;;  %v456_v36 = vpop.permute.xlu2 %455 }
 0x1d6   :  { %v605_v8 = vsub.f32 %v1825_v53, %v456_v36 }
 0x1da   :  { %v437_v54 = vpop.trf.xlu0 }
 0x1db   :  { %515 = vperm.xlu2 %1336, %v405_v32  }
 0x1dd   :  { %v446_v16 = vpop.permute.xlu1 %445  ;;  %v2069_v47 = vpop.permute.xlu2 %535 }
 0x1de   :  { %v600_v25 = vsub.f32 %v1604_v5, %v446_v16  ;;  %v601_v35 = vsub.f32 %v1821_v24, %v446_v16  ;;  %v630_v5 = vsub.f32 %v1717_v58, %v2067_v61  ;;  %v631_v16 = vsub.f32 %v1943_v30, %v2067_v61 }
 0x1e0   :  { %v668_v15 = vmul.f32 1.442695, %v601_v35  ;;  %v726_v42 = vmul.f32 1.442695, %v630_v5 }
 0x1e3   :  { %595 = vperm.xlu2 %1336, %v437_v54   ;;  %v599_v54 = vsub.f32 %v1819_v44, %v441_v11 }
 0x1e5   :  { %v2071_v45 = vpop.permute.xlu1 %530  ;;  %v2073_v41 = vpop.permute.xlu2 %465  ;;  %v664_v4 = vmul.f32 1.442695, %v599_v54 }
 0x1e6   :  { %v634_v3 = vsub.f32 %v1731_v18, %v2071_v45 }
 0x1ed   :  { %v461_v46 = vpop.permute.xlu1 %460  ;;  %v2075_v40 = vpop.permute.xlu2 %545 }
 0x1ee   :  { %2845 = vst [vmem:[#allocation88_spill] sm:$0xff] %v2075_v40  ;;  %v632_v40 = vsub.f32 %v1719_v59, %v526_v37  ;;  %v604_v59 = vsub.f32 %v1612_v9, %v456_v36  ;;  %v606_v43 = vsub.f32 %v1622_v12, %v461_v46  ;;  %v607_v58 = vsub.f32 %v1847_v63, %v461_v46 }
 0x1ef   :  { %v676_v9 = vmul.f32 1.442695, %v605_v8  ;;  %v608_v12 = vsub.f32 %v1624_v13, %v2073_v41  ;;  %v609_v63 = vsub.f32 %v1849_v33, %v2073_v41 }
 0x1f0   :  { %v680_v36 = vmul.f32 1.442695, %v607_v58 }
 0x1f5   :  { %v2077_v28 = vpop.permute.xlu1 %540  ;;  %v2079_v29 = vpop.permute.xlu2 %475 }
 0x1f6   :  { %2846 = vst [vmem:[#allocation89_spill] sm:$0xff] %v2077_v28  ;;  %v662_v28 = vmul.f32 1.442695, %v598_v62  ;;  %v613_v50 = vsub.f32 %v1865_v52, %v2079_v29 }
 0x1f8   :  { %1338 = vpow2.f32 %v662_v28 }
 0x1fd   :  { %v2081_v48 = vpop.permute.xlu1 %470  ;;  %v2083_v51 = vpop.permute.xlu2 %555 }
 0x1fe   :  { %2847 = vst [vmem:[#allocation90_spill] sm:$0xff] %v2083_v51  ;;  %v633_v51 = vsub.f32 %v1945_v22, %v526_v37  ;;  %v670_v22 = vmul.f32 1.442695, %v602_v7  ;;  %v672_v37 = vmul.f32 1.442695, %v603_v31  ;;  %v1339_v28 = vpop.eup %1338  ;;  %v636_v7 = vsub.f32 %v1733_v19, %v2069_v47 }
 0x1ff   :  { %v678_v31 = vmul.f32 1.442695, %v606_v43  ;;  %v610_v19 = vsub.f32 %v1644_v20, %v2081_v48  ;;  %v611_v33 = vsub.f32 %v1863_v49, %v2081_v48  ;;  %v637_v20 = vsub.f32 %v1961_v38, %v2069_v47 }
 0x200   :  { %v732_v11 = vmul.f32 1.442695, %v633_v51  ;;  %v728_v51 = vmul.f32 1.442695, %v631_v16  ;;  %v738_v62 = vmul.f32 1.442695, %v636_v7  ;;  %v612_v38 = vsub.f32 %v1646_v21, %v2079_v29 }
 0x201   :  { %v2143_v1 = vsel %vm172_vm0, %v1339_v28, 0.0  ;;  %v684_v49 = vmul.f32 1.442695, %v609_v63  ;;  %v686_v47 = vmul.f32 1.442695, %v610_v19 }
 0x202   :  { %v688_v5 = vmul.f32 1.442695, %v611_v33  ;;  %v690_v58 = vmul.f32 1.442695, %v612_v38 }
 0x205   :  { %v2085_v32 = vpop.permute.xlu1 %550  ;;  %v2087_v23 = vpop.permute.xlu2 %485 }
 0x206   :  { %2848 = vst [vmem:[#allocation91_spill] sm:$0xff] %v2085_v32  ;;  %v666_v32 = vmul.f32 1.442695, %v600_v25  ;;  %v682_v25 = vmul.f32 1.442695, %v608_v12  ;;  %v616_v28 = vsub.f32 %v1662_v27, %v2087_v23  ;;  %v617_v12 = vsub.f32 %v1881_v55, %v2087_v23 }
 0x208   :  { %1340 = vpow2.f32 %v666_v32 }
 0x209   :  { %1342 = vpow2.f32 %v668_v15 }
 0x20a   :  { %1344 = vpow2.f32 %v664_v4 }
 0x20d   :  { %v2090_v14 = vpop.permute.xlu1 %480  ;;  %v2092_v10 = vpop.permute.xlu2 %565 }
 0x20e   :  { %2849 = vst [vmem:[#allocation92_spill] sm:$0xff] %v2092_v10  ;;  %v730_v10 = vmul.f32 1.442695, %v632_v40  ;;  %v674_v40 = vmul.f32 1.442695, %v604_v59  ;;  %v1341_v15 = vpop.eup %1340 }
 0x20f   :  { %v1343_v53 = vpop.eup %1342  ;;  %v2129_v13 = vsel %vm174_vm1, %v1341_v15, 0.0  ;;  %v740_v59 = vmul.f32 1.442695, %v637_v20  ;;  %v700_v20 = vmul.f32 1.442695, %v617_v12 }
 0x210   :  { %1346 = vpow2.f32 %v730_v10  ;;  %v1345_v46 = vpop.eup %1344  ;;  %v2137_v10 = vsel %vm175_vm13, %v1343_v53, 0.0  ;;  %v854_v57 = vadd.f32 %v2129_v13, %v2143_v1 }
 0x211   :  { %1348 = vpow2.f32 %v732_v11  ;;  %v2147_v54 = vsel %vm173_vm12, %v1345_v46, 0.0 }
 0x212   :  { %1350 = vpow2.f32 %v670_v22  ;;  %v891_v0 = vadd.f32 %v2137_v10, %v2147_v54  ;;  %v614_v22 = vsub.f32 %v1660_v26, %v2090_v14 }
 0x213   :  { %1352 = vpow2.f32 %v672_v37  ;;  %v615_v37 = vsub.f32 %v1879_v39, %v2090_v14  ;;  %v692_v14 = vmul.f32 1.442695, %v613_v50  ;;  %v2855_v50 = vld [vmem:[#allocation12_spill] sm:$0xff] }
 0x214   :  { %1354 = vpow2.f32 %v726_v42  ;;  %vm2856_vm0 = vcmp.gt.f32.partialorder %v2855_v50, 0.0  ;;  %v1470_v50 = vld [vmem:[#allocation2 + $0xd0] sm:$0xff] }
 0x215   :  { %v2103_v24 = vpop.permute.xlu1 %560  ;;  %v2105_v44 = vpop.permute.xlu2 %495  ;;  %1356 = vpow2.f32 %v674_v40  ;;  %v696_v17 = vmul.f32 1.442695, %v615_v37 }
 0x216   :  { %v2125_v32 = vpop.eup %1346  ;;  %1358 = vpow2.f32 %v676_v9  ;;  %v694_v9 = vmul.f32 1.442695, %v614_v22 }
 0x217   :  { %v2133_v41 = vpop.eup %1348  ;;  %1360 = vpow2.f32 %v678_v31 }
 0x218   :  { %v1351_v35 = vpop.eup %1350  ;;  %1362 = vpow2.f32 %v680_v36  ;;  %v2850_v36 = vld [vmem:[#allocation49_spill] sm:$0xff] }
 0x219   :  { %v1353_v48 = vpop.eup %1352  ;;  %1364 = vpow2.f32 %v728_v51  ;;  %v2163_v21 = vsel %vm176_vm2, %v1351_v35, 0.0  ;;  %v698_v51 = vmul.f32 1.442695, %v616_v28  ;;  %v2861_v28 = vld [vmem:[#allocation53_spill] sm:$0xff] }
 0x21a   :  { %v2153_v4 = vpop.eup %1354  ;;  %1366 = vpow2.f32 %v738_v62  ;;  %v2173_v29 = vsel %vm177_vm10, %v1353_v48, 0.0  ;;  %v855_v26 = vadd.f32 %v854_v57, %v2163_v21  ;;  %v635_v62 = vsub.f32 %v2851_v56, %v2071_v45  ;;  %v2853_v57 = vld [vmem:[#allocation20_spill] sm:$0xff] }
 0x21b   :  { %v1357_v11 = vpop.eup %1356  ;;  %1368 = vpow2.f32 %v682_v25  ;;  %v892_v39 = vadd.f32 %v891_v0, %v2173_v29  ;;  %v620_v38 = vsub.f32 %v2853_v57, %v2105_v44  ;;  %v2867_v56 = vld [vmem:[#allocation44_spill] sm:$0xff] }
 0x21c   :  { %v1359_v8 = vpop.eup %1358  ;;  %1370 = vpow2.f32 %v684_v49  ;;  %v2178_v16 = vsel %vm178_vm3, %v1357_v11, 0.0  ;;  %v734_v49 = vmul.f32 1.442695, %v634_v3  ;;  %v2857_v11 = vld [vmem:[#allocation50_spill] sm:$0xff]  ;;  %vm2868_vm3 = vcmp.gt.f32.partialorder %v2867_v56, 0.0 }
 0x21d   :  { %v2119_v30 = vpop.permute.xlu1 %490  ;;  %v2121_v61 = vpop.permute.xlu2 %575  ;;  %1372 = vpow2.f32 %v686_v47  ;;  %v2185_v60 = vsel %vm179_vm11, %v1359_v8, 0.0  ;;  %v856_v53 = vadd.f32 %v855_v26, %v2178_v16  ;;  %v706_v12 = vmul.f32 1.442695, %v620_v38 }
 0x21e   :  { %v1361_v52 = vpop.eup %1360  ;;  %1374 = vpow2.f32 %v688_v5  ;;  %v618_v63 = vsub.f32 %v1676_v34, %v2119_v30  ;;  %v893_v6 = vadd.f32 %v892_v39, %v2185_v60  ;;  %v619_v46 = vsub.f32 %v2850_v36, %v2119_v30 }
 0x21f   :  { %v1363_v2 = vpop.eup %1362  ;;  %1376 = vpow2.f32 %v740_v59  ;;  %v2195_v15 = vsel %vm180_vm4, %v1361_v52, 0.0  ;;  %v621_v59 = vsub.f32 %v2857_v11, %v2105_v44  ;;  %v2858_v52 = vld [vmem:[#allocation43_spill] sm:$0xff] }
 0x220   :  { %v2181_v40 = vpop.eup %1364  ;;  %v2202_v27 = vsel %vm181_vm14, %v1363_v2, 0.0  ;;  %1378 = vpow2.f32 %v690_v58  ;;  %v857_v23 = vadd.f32 %v856_v53, %v2195_v15  ;;  %v702_v47 = vmul.f32 1.442695, %v618_v63  ;;  %v2860_v58 = vld [vmem:[#allocation23_spill] sm:$0xff] }
 0x221   :  { %v2189_v7 = vpop.eup %1366  ;;  %1380 = vpow2.f32 %v692_v14  ;;  %v894_v33 = vadd.f32 %v893_v6, %v2202_v27  ;;  %v704_v22 = vmul.f32 1.442695, %v619_v46  ;;  %vm2859_vm1 = vcmp.gt.f32.partialorder %v2858_v52, 0.0  ;;  %v2863_v6 = vld [vmem:[#allocation33_spill] sm:$0xff]  ;;  %v2864_v46 = vld [vmem:[#allocation67_spill] sm:$0xff] }
 0x222   :  { %v1369_v31 = vpop.eup %1368  ;;  %1382 = vpow2.f32 %v694_v9  ;;  %v708_v63 = vmul.f32 1.442695, %v621_v59 }
 0x223   :  { %v1371_v18 = vpop.eup %1370  ;;  %1384 = vpow2.f32 %v696_v17  ;;  %v2219_v48 = vsel %vm182_vm5, %v1369_v31, 0.0  ;;  %v736_v31 = vmul.f32 1.442695, %v635_v62  ;;  %v2869_v62 = vld [vmem:[#allocation14_spill] sm:$0xff] }
 0x224   :  { %v1373_v55 = vpop.eup %1372  ;;  %v2225_v45 = vsel %vm183_vm15, %v1371_v18, 0.0  ;;  %v858_v37 = vadd.f32 %v857_v23, %v2219_v48  ;;  %1386 = vpow2.f32 %v698_v51  ;;  %v2862_v18 = vld [vmem:[#allocation88_spill] sm:$0xff]  ;;  %v2865_v51 = vld [vmem:[#allocation13_spill] sm:$0xff]  ;;  %vm2870_vm4 = vcmp.gt.f32.partialorder %v2869_v62, 0.0 }
 0x225   :  { %v2167_v43 = vpop.permute.xlu1 %570  ;;  %v2169_v42 = vpop.permute.xlu2 %505  ;;  %v2229_v5 = vsel %vm2856_vm0, %v1373_v55, 0.0  ;;  %v895_v14 = vadd.f32 %v894_v33, %v2225_v45  ;;  %1388 = vpow2.f32 %v700_v20  ;;  %v640_v36 = vsub.f32 %v2863_v6, %v2862_v18  ;;  %v2877_v6 = vld [vmem:[#allocation66_spill] sm:$0xff] }
 0x226   :  { %v1375_v19 = vpop.eup %1374  ;;  %v859_v44 = vadd.f32 %v858_v37, %v2229_v5  ;;  %1390 = vpow2.f32 %v702_v47  ;;  %v641_v55 = vsub.f32 %v2864_v46, %v2862_v18  ;;  %vm2866_vm2 = vcmp.gt.f32.partialorder %v2865_v51, 0.0  ;;  %v2871_v47 = vld [vmem:[#allocation45_spill] sm:$0xff]  ;;  %v2878_v46 = vld [vmem:[#allocation15_spill] sm:$0xff]  ;;  %v2880_v51 = vld [vmem:[#allocation16_spill] sm:$0xff] }
 0x227   :  { %v2215_v35 = vpop.eup %1376  ;;  %v2236_v26 = vsel %vm2859_vm1, %v1375_v19, 0.0  ;;  %1392 = vpow2.f32 %v704_v22  ;;  %vm2872_vm5 = vcmp.gt.f32.partialorder %v2871_v47, 0.0  ;;  %v624_v11 = vsub.f32 %v1470_v50, %v2169_v42 }
 0x228   :  { %v1379_v8 = vpop.eup %1378  ;;  %v896_v53 = vadd.f32 %v895_v14, %v2236_v26  ;;  %1394 = vpow2.f32 %v734_v49  ;;  %vm2879_vm10 = vcmp.gt.f32.partialorder %v2878_v46, 0.0  ;;  %vm2881_vm11 = vcmp.gt.f32.partialorder %v2880_v51, 0.0  ;;  %v2889_v46 = vld [vmem:[#allocation90_spill] sm:$0xff] }
 0x229   :  { %v1381_v39 = vpop.eup %1380  ;;  %v2249_v19 = vsel %vm2866_vm2, %v1379_v8, 0.0  ;;  %1396 = vpow2.f32 %v706_v12  ;;  %v2873_v8 = vld [vmem:[#allocation54_spill] sm:$0xff]  ;;  %v714_v18 = vmul.f32 1.442695, %v624_v11 }
 0x22a   :  { %v1383_v3 = vpop.eup %1382  ;;  %v2253_v33 = vsel %vm2868_vm3, %v1381_v39, 0.0  ;;  %v860_v38 = vadd.f32 %v859_v44, %v2249_v19  ;;  %1398 = vpow2.f32 %v708_v63  ;;  %v625_v37 = vsub.f32 %v2873_v8, %v2169_v42  ;;  %v1471_v39 = vld [vmem:[#allocation2 + $0xf0] sm:$0xff] }
 0x22b   :  { %v1385_v17 = vpop.eup %1384  ;;  %v2257_v20 = vsel %vm2870_vm4, %v1383_v3, 0.0  ;;  %v897_v22 = vadd.f32 %v896_v53, %v2253_v33  ;;  %v2875_v3 = vld [vmem:[#allocation32_spill] sm:$0xff]  ;;  %v748_v42 = vmul.f32 1.442695, %v641_v55  ;;  %v2885_v55 = vld [vmem:[#allocation47_spill] sm:$0xff] }
 0x22c   :  { %v1387_v57 = vpop.eup %1386  ;;  %v2264_v0 = vsel %vm2872_vm5, %v1385_v17, 0.0  ;;  %v2876_v17 = vld [vmem:[#allocation58_spill] sm:$0xff]  ;;  %v716_v62 = vmul.f32 1.442695, %v625_v37  ;;  %vm2886_vm13 = vcmp.gt.f32.partialorder %v2885_v55, 0.0 }
 0x22d   :  { %v501_v34 = vpop.permute.xlu1 %500  ;;  %v2213_v25 = vpop.permute.xlu2 %585  ;;  %v898_v12 = vadd.f32 %v897_v22, %v2264_v0 }
 0x22e   :  { %v622_v2 = vsub.f32 %v2860_v58, %v501_v34  ;;  %v623_v9 = vsub.f32 %v2861_v28, %v501_v34  ;;  %v1389_v59 = vpop.eup %1388  ;;  %v746_v58 = vmul.f32 1.442695, %v640_v36 }
 0x22f   :  { %v1391_v52 = vpop.eup %1390 }
 0x230   :  { %v710_v23 = vmul.f32 1.442695, %v622_v2  ;;  %v712_v34 = vmul.f32 1.442695, %v623_v9  ;;  %v861_v2 = vadd.f32 %v860_v38, %v2257_v20  ;;  %v1393_v28 = vpop.eup %1392  ;;  %v2874_v9 = vld [vmem:[#allocation89_spill] sm:$0xff]  ;;  %v2285_v56 = vsel %vm2881_vm11, %v1391_v52, 0.0 }
 0x231   :  { %v638_v44 = vsub.f32 %v2875_v3, %v2874_v9  ;;  %v2275_v63 = vpop.eup %1394  ;;  %v639_v36 = vsub.f32 %v2877_v6, %v2874_v9  ;;  %2882 = vst [vmem:[#allocation49_spill] sm:$0xff] %v2285_v56  ;;  %v2883_v38 = vld [vmem:[#allocation46_spill] sm:$0xff]  ;;  %v2294_v47 = vsel %vm2886_vm13, %v1393_v28, 0.0  ;;  %v2888_v3 = vld [vmem:[#allocation57_spill] sm:$0xff] }
 0x232   :  { %1400 = vpow2.f32 %v710_v23  ;;  %v2281_v23 = vsel %vm2879_vm10, %v1387_v57, 0.0  ;;  %vm2884_vm12 = vcmp.gt.f32.partialorder %v2883_v38, 0.0  ;;  %2887 = vst [vmem:[#allocation63_spill] sm:$0xff] %v2294_v47  ;;  %v1473_v28 = vld [vmem:[#allocation2 + $0x170] sm:$0xff] }
 0x233   :  { %1402 = vpow2.f32 %v712_v34  ;;  %v1397_v34 = vpop.eup %1396  ;;  %v742_v57 = vmul.f32 1.442695, %v638_v44  ;;  %v744_v6 = vmul.f32 1.442695, %v639_v36  ;;  %v2895_v36 = vld [vmem:[#allocation18_spill] sm:$0xff] }
 0x234   :  { %1404 = vpow2.f32 %v736_v31  ;;  %v862_v31 = vadd.f32 %v861_v2, %v2281_v23  ;;  %v1399_v11 = vpop.eup %1398  ;;  %vm2896_vm15 = vcmp.gt.f32.partialorder %v2895_v36, 0.0 }
 0x235   :  { %v2259_v49 = vpop.permute.xlu1 %580  ;;  %v516_v30 = vpop.permute.xlu2 %515  ;;  %1406 = vpow2.f32 %v746_v58 }
 0x236   :  { %v628_v14 = vsub.f32 %v1471_v39, %v516_v30  ;;  %v629_v53 = vsub.f32 %v2876_v17, %v516_v30  ;;  %v2289_v30 = vsel %vm2884_vm12, %v1389_v59, 0.0  ;;  %v863_v39 = vadd.f32 %v862_v31, %v2285_v56  ;;  %v1472_v59 = vld [vmem:[#allocation2 + $0xe0] sm:$0xff] }
 0x237   :  { %v899_v22 = vadd.f32 %v898_v12, %v2289_v30  ;;  %1408 = vpow2.f32 %v714_v18  ;;  %v1474_v12 = vld [vmem:[#allocation2 + $0x160] sm:$0xff]  ;;  %v2891_v18 = vld [vmem:[#allocation70_spill] sm:$0xff] }
 0x238   :  { %v722_v50 = vmul.f32 1.442695, %v628_v14  ;;  %v724_v8 = vmul.f32 1.442695, %v629_v53  ;;  %v1401_v37 = vpop.eup %1400  ;;  %v644_v14 = vsub.f32 %v1473_v28, %v2889_v46  ;;  %1410 = vpow2.f32 %v716_v62  ;;  %v2890_v53 = vld [vmem:[#allocation91_spill] sm:$0xff]  ;;  %v2898_v62 = vld [vmem:[#allocation48_spill] sm:$0xff] }
 0x239   :  { %v1403_v17 = vpop.eup %1402  ;;  %v900_v58 = vadd.f32 %v899_v22, %v2294_v47  ;;  %v642_v51 = vsub.f32 %v1474_v12, %v2890_v53  ;;  %v643_v55 = vsub.f32 %v2891_v18, %v2890_v53  ;;  %vm2899_vm0 = vcmp.gt.f32.partialorder %v2898_v62, 0.0  ;;  %v2955_v47 = vld [vmem:[#allocation68_spill] sm:$0xff] }
 0x23a   :  { %v1405_v44 = vpop.eup %1404  ;;  %1412 = vpow2.f32 %v722_v50  ;;  %v2314_v22 = vsel %vm2899_vm0, %v1399_v11, 0.0 }
 0x23b   :  { %1414 = vpow2.f32 %v724_v8  ;;  %2900 = vst [vmem:[#allocation42_spill] sm:$0xff] %v2314_v22  ;;  %v1407_v28 = vpop.eup %1406  ;;  %v750_v11 = vmul.f32 1.442695, %v642_v51 }
 0x23d   :  { %v511_v52 = vpop.permute.xlu1 %510  ;;  %v1409_v12 = vpop.eup %1408 }
 0x23e   :  { %v626_v9 = vsub.f32 %v1472_v59, %v511_v52  ;;  %v627_v2 = vsub.f32 %v2888_v3, %v511_v52  ;;  %v2892_v59 = vld [vmem:[#allocation17_spill] sm:$0xff]  ;;  %v2310_v3 = vsel %vm2896_vm15, %v1401_v37, 0.0  ;;  %v754_v37 = vmul.f32 1.442695, %v644_v14  ;;  %v1411_v53 = vpop.eup %1410  ;;  %v2908_v14 = vld [vmem:[#allocation19_spill] sm:$0xff] }
 0x23f   :  { %vm2893_vm14 = vcmp.gt.f32.partialorder %v2892_v59, 0.0  ;;  %2897 = vst [vmem:[#allocation20_spill] sm:$0xff] %v2310_v3  ;;  %v752_v59 = vmul.f32 1.442695, %v643_v55  ;;  %vm2909_vm4 = vcmp.gt.f32.partialorder %v2908_v14, 0.0  ;;  %v2912_v55 = vld [vmem:[#allocation52_spill] sm:$0xff] }
 0x240   :  { %v718_v38 = vmul.f32 1.442695, %v626_v9  ;;  %v720_v31 = vmul.f32 1.442695, %v627_v2  ;;  %v2306_v52 = vsel %vm2893_vm14, %v1397_v34, 0.0  ;;  %v2901_v9 = vld [vmem:[#allocation51_spill] sm:$0xff]  ;;  %v901_v34 = vadd.f32 %v900_v58, %v2314_v22 }
 0x241   :  { %2894 = vst [vmem:[#allocation11_spill] sm:$0xff] %v2306_v52  ;;  %v864_v50 = vadd.f32 %v863_v39, %v2306_v52  ;;  %vm2902_vm1 = vcmp.gt.f32.partialorder %v2901_v9, 0.0  ;;  %v1413_v39 = vpop.eup %1412  ;;  %v2906_v58 = vld [vmem:[#allocation60_spill] sm:$0xff]  ;;  %vm2913_vm5 = vcmp.gt.f32.partialorder %v2912_v55, 0.0 }
 0x242   :  { %v2319_v2 = vsel %vm2902_vm1, %v1403_v17, 0.0  ;;  %1416 = vpow2.f32 %v718_v38  ;;  %v1415_v17 = vpop.eup %1414  ;;  %v2904_v38 = vld [vmem:[#allocation25_spill] sm:$0xff]  ;;  %vm2907_vm3 = vcmp.gt.f32.partialorder %v2906_v58, 0.0  ;;  %v2342_v62 = vsel %vm2913_vm5, %v1411_v53, 0.0  ;;  %v2915_v9 = vld [vmem:[#allocation24_spill] sm:$0xff] }
 0x243   :  { %2903 = vst [vmem:[#allocation12_spill] sm:$0xff] %v2319_v2  ;;  %1418 = vpow2.f32 %v720_v31  ;;  %v865_v8 = vadd.f32 %v864_v50, %v2310_v3  ;;  %v902_v18 = vadd.f32 %v901_v34, %v2319_v2  ;;  %vm2905_vm2 = vcmp.gt.f32.partialorder %v2904_v38, 0.0  ;;  %v2911_v31 = vld [vmem:[#allocation71_spill] sm:$0xff] }
 0x244   :  { %1420 = vpow2.f32 %v748_v42  ;;  %v2327_v36 = vsel %vm2905_vm2, %v2125_v32, 0.0  ;;  %v2332_v42 = vsel %vm2907_vm3, %v2133_v41, 0.0  ;;  %2914 = vst [vmem:[#allocation43_spill] sm:$0xff] %v2342_v62  ;;  %vm2916_vm10 = vcmp.gt.f32.partialorder %v2915_v9, 0.0 }
 0x245   :  { %1422 = vpow2.f32 %v742_v57  ;;  %v2336_v57 = vsel %vm2909_vm4, %v1409_v12, 0.0  ;;  %v2348_v41 = vsel %vm2916_vm10, %v2153_v4, 0.0  ;;  %v903_v34 = vadd.f32 %v902_v18, %v2342_v62  ;;  %v2917_v12 = vld [vmem:[#allocation21_spill] sm:$0xff]  ;;  %v2925_v18 = vld [vmem:[#allocation27_spill] sm:$0xff] }
 0x246   :  { %1424 = vpow2.f32 %v744_v6  ;;  %2910 = vst [vmem:[#allocation50_spill] sm:$0xff] %v2336_v57  ;;  %v645_v6 = vsub.f32 %v2911_v31, %v2889_v46  ;;  %v866_v32 = vadd.f32 %v865_v8, %v2336_v57  ;;  %vm2918_vm11 = vcmp.gt.f32.partialorder %v2917_v12, 0.0  ;;  %v2922_v8 = vld [vmem:[#allocation55_spill] sm:$0xff]  ;;  %v2945_v57 = vld [vmem:[#allocation28_spill] sm:$0xff] }
 0x247   :  { %1426 = vpow2.f32 %v754_v37  ;;  %v2920_v37 = vld [vmem:[#allocation59_spill] sm:$0xff]  ;;  %vm2923_vm13 = vcmp.gt.f32.partialorder %v2922_v8, 0.0  ;;  %vm2926_vm14 = vcmp.gt.f32.partialorder %v2925_v18, 0.0  ;;  %vm2946_vm10 = vcmp.gt.f32.partialorder %v2945_v57, 0.0 }
 0x248   :  { %v1417_v51 = vpop.eup %1416  ;;  %1428 = vpow2.f32 %v750_v11  ;;  %vm2921_vm12 = vcmp.gt.f32.partialorder %v2920_v37, 0.0  ;;  %v2368_v14 = vsel %vm2926_vm14, %v2189_v7, 0.0  ;;  %v756_v9 = vmul.f32 1.442695, %v645_v6  ;;  %v2932_v37 = vld [vmem:[#allocation56_spill] sm:$0xff]  ;;  %v2939_v6 = vld [vmem:[#allocation74_spill] sm:$0xff] }
 0x249   :  { %v1419_v50 = vpop.eup %1418  ;;  %v2353_v38 = vsel %vm2918_vm11, %v1417_v51, 0.0  ;;  %v2358_v53 = vsel %vm2921_vm12, %v2181_v40, 0.0  ;;  %1430 = vpow2.f32 %v752_v59  ;;  %v2927_v51 = vld [vmem:[#allocation62_spill] sm:$0xff]  ;;  %vm2933_vm1 = vcmp.gt.f32.partialorder %v2932_v37, 0.0  ;;  %v2940_v37 = vld [vmem:[#allocation29_spill] sm:$0xff]  ;;  %v2950_v57 = vld [vmem:[#allocation31_spill] sm:$0xff] }
 0x24a   :  { %2919 = vst [vmem:[#allocation23_spill] sm:$0xff] %v2353_v38  ;;  %v1421_v46 = vpop.eup %1420  ;;  %v2362_v58 = vsel %vm2923_vm13, %v1419_v50, 0.0  ;;  %v867_v4 = vadd.f32 %v866_v32, %v2353_v38  ;;  %vm2928_vm15 = vcmp.gt.f32.partialorder %v2927_v51, 0.0  ;;  %v2929_v40 = vld [vmem:[#allocation22_spill] sm:$0xff]  ;;  %v1475_v32 = vld [vmem:[#allocation2 + $0x180] sm:$0xff]  ;;  %v2383_v7 = vsel %vm2933_vm1, %v1415_v17, 0.0 }
 0x24b   :  { %2924 = vst [vmem:[#allocation53_spill] sm:$0xff] %v2362_v58  ;;  %v1423_v11 = vpop.eup %1422  ;;  %v2373_v31 = vsel %vm2928_vm15, %v2215_v35, 0.0  ;;  %vm2930_vm0 = vcmp.gt.f32.partialorder %v2929_v40, 0.0  ;;  %v904_v55 = vadd.f32 %v903_v34, %v2362_v58  ;;  %v646_v12 = vsub.f32 %v1475_v32, %v2103_v24  ;;  %v2935_v35 = vld [vmem:[#allocation26_spill] sm:$0xff]  ;;  %v1482_v38 = vld [vmem:[#allocation2 + $0x1f0] sm:$0xff] }
 0x24c   :  { %v2377_v59 = vsel %vm2930_vm0, %v1413_v39, 0.0  ;;  %v1425_v50 = vpop.eup %1424  ;;  %2934 = vst [vmem:[#allocation33_spill] sm:$0xff] %v2383_v7  ;;  %vm2936_vm2 = vcmp.gt.f32.partialorder %v2935_v35, 0.0  ;;  %v2937_v39 = vld [vmem:[#allocation61_spill] sm:$0xff]  ;;  %v647_v34 = vsub.f32 %v2939_v6, %v2103_v24  ;;  %vm2941_vm4 = vcmp.gt.f32.partialorder %v2940_v37, 0.0  ;;  %v2944_v35 = vld [vmem:[#allocation92_spill] sm:$0xff] }
 0x24d   :  { %2931 = vst [vmem:[#allocation88_spill] sm:$0xff] %v2377_v59  ;;  %v868_v8 = vadd.f32 %v867_v4, %v2377_v59  ;;  %v2389_v18 = vsel %vm2936_vm2, %v2275_v63, 0.0  ;;  %vm2938_vm3 = vcmp.gt.f32.partialorder %v2937_v39, 0.0  ;;  %v905_v40 = vadd.f32 %v904_v55, %v2383_v7  ;;  %v1427_v32 = vpop.eup %1426  ;;  %v2942_v4 = vld [vmem:[#allocation65_spill] sm:$0xff]  ;;  %v2947_v55 = vld [vmem:[#allocation64_spill] sm:$0xff]  ;;  %v2960_v58 = vld [vmem:[#allocation86_spill] sm:$0xff] }
 0x24e   :  { %v2393_v51 = vsel %vm2938_vm3, %v1405_v44, 0.0  ;;  %v2400_v17 = vsel %vm2941_vm4, %v1407_v28, 0.0  ;;  %vm2943_vm5 = vcmp.gt.f32.partialorder %v2942_v4, 0.0  ;;  %v1476_v63 = vld [vmem:[#allocation2 + $0x190] sm:$0xff]  ;;  %v1429_v39 = vpop.eup %1428  ;;  %v2410_v24 = vsel %vm2946_vm10, %v1423_v11, 0.0  ;;  %v2949_v28 = vld [vmem:[#allocation75_spill] sm:$0xff] }
 0x24f   :  { %v2404_v59 = vsel %vm2943_vm5, %v1421_v46, 0.0  ;;  %v648_v62 = vsub.f32 %v1476_v63, %v2944_v35  ;;  %v869_v44 = vadd.f32 %v868_v8, %v2348_v41  ;;  %vm2948_vm11 = vcmp.gt.f32.partialorder %v2947_v55, 0.0  ;;  %v1431_v4 = vpop.eup %1430  ;;  %v1477_v63 = vld [vmem:[#allocation2 + $0x1a0] sm:$0xff] }
 0x250   :  { %v2414_v6 = vsel %vm2948_vm11, %v1425_v50, 0.0  ;;  %v649_v37 = vsub.f32 %v2949_v28, %v2944_v35  ;;  %v906_v46 = vadd.f32 %v905_v40, %v2358_v53  ;;  %1432 = vpow2.f32 %v756_v9  ;;  %v2952_v50 = vld [vmem:[#allocation78_spill] sm:$0xff] }
 0x251   :  { %v758_v7 = vmul.f32 1.442695, %v646_v12  ;;  %v650_v8 = vsub.f32 %v1477_v63, %v2167_v43  ;;  %v870_v2 = vadd.f32 %v869_v44, %v2327_v36  ;;  %vm2951_vm12 = vcmp.gt.f32.partialorder %v2950_v57, 0.0  ;;  %v2953_v28 = vld [vmem:[#allocation30_spill] sm:$0xff]  ;;  %v1478_v12 = vld [vmem:[#allocation2 + $0x1b0] sm:$0xff]  ;;  %v2957_v57 = vld [vmem:[#allocation79_spill] sm:$0xff] }
 0x252   :  { %v2423_v11 = vsel %vm2951_vm12, %v1427_v32, 0.0  ;;  %v760_v55 = vmul.f32 1.442695, %v647_v34  ;;  %v651_v3 = vsub.f32 %v2952_v50, %v2167_v43  ;;  %v907_v35 = vadd.f32 %v906_v46, %v2332_v42 }
 0x253   :  { %vm2954_vm13 = vcmp.gt.f32.partialorder %v2953_v28, 0.0  ;;  %v762_v9 = vmul.f32 1.442695, %v648_v62  ;;  %v652_v63 = vsub.f32 %v1478_v12, %v2121_v61  ;;  %v871_v44 = vadd.f32 %v870_v2, %v2389_v18  ;;  %v2958_v2 = vld [vmem:[#allocation82_spill] sm:$0xff] }
 0x254   :  { %v2430_v40 = vsel %vm2954_vm13, %v1429_v39, 0.0  ;;  %vm2956_vm14 = vcmp.gt.f32.partialorder %v2955_v47, 0.0  ;;  %v764_v34 = vmul.f32 1.442695, %v649_v37  ;;  %v653_v43 = vsub.f32 %v2957_v57, %v2121_v61  ;;  %v1479_v39 = vld [vmem:[#allocation2 + $0x1c0] sm:$0xff]  ;;  %v591_v37 = vpop.permute.xlu1 %590  ;;  %v1480_v57 = vld [vmem:[#allocation2 + $0x1d0] sm:$0xff] }
 0x255   :  { %v2436_v32 = vsel %vm2956_vm14, %v1431_v4, 0.0  ;;  %v908_v46 = vadd.f32 %v907_v35, %v2393_v51  ;;  %1434 = vpow2.f32 %v758_v7  ;;  %v766_v50 = vmul.f32 1.442695, %v650_v8 }
 0x256   :  { %v654_v62 = vsub.f32 %v1479_v39, %v2259_v49  ;;  %v872_v28 = vadd.f32 %v871_v44, %v2368_v14  ;;  %1436 = vpow2.f32 %v760_v55  ;;  %v768_v12 = vmul.f32 1.442695, %v651_v3  ;;  %v1433_v56 = vpop.eup %1432  ;;  %v2959_v44 = vld [vmem:[#allocation83_spill] sm:$0xff]  ;;  %v596_v39 = vpop.permute.xlu2 %595 }
 0x257   :  { %v655_v47 = vsub.f32 %v2958_v2, %v2259_v49  ;;  %v909_v4 = vadd.f32 %v908_v46, %v2373_v31  ;;  %1438 = vpow2.f32 %v762_v9  ;;  %v770_v61 = vmul.f32 1.442695, %v652_v63  ;;  %v1481_v2 = vld [vmem:[#allocation2 + $0x1e0] sm:$0xff] }
 0x258   :  { %v656_v7 = vsub.f32 %v1480_v57, %v2213_v25  ;;  %v873_v8 = vadd.f32 %v872_v28, %v2410_v24  ;;  %1440 = vpow2.f32 %v764_v34  ;;  %v772_v35 = vmul.f32 1.442695, %v653_v43 }
 0x259   :  { %v657_v55 = vsub.f32 %v2959_v44, %v2213_v25  ;;  %v910_v3 = vadd.f32 %v909_v4, %v2414_v6  ;;  %1442 = vpow2.f32 %v766_v50  ;;  %v774_v49 = vmul.f32 1.442695, %v654_v62  ;;  %v2961_v62 = vld [vmem:[#allocation87_spill] sm:$0xff] }
 0x25a   :  { %v874_v46 = vadd.f32 %v873_v8, %v2400_v17  ;;  %v658_v9 = vsub.f32 %v1481_v2, %v591_v37  ;;  %1444 = vpow2.f32 %v768_v12  ;;  %v776_v63 = vmul.f32 1.442695, %v655_v47  ;;  %v2962_v47 = vld [vmem:[#allocation69_spill] sm:$0xff] }
 0x25b   :  { %v911_v57 = vadd.f32 %v910_v3, %v2404_v59  ;;  %v659_v28 = vsub.f32 %v2960_v58, %v591_v37  ;;  %v1435_v34 = vpop.eup %1434  ;;  %1446 = vpow2.f32 %v770_v61  ;;  %v778_v43 = vmul.f32 1.442695, %v656_v7 }
 0x25c   :  { %v660_v25 = vsub.f32 %v1482_v38, %v596_v39  ;;  %v875_v4 = vadd.f32 %v874_v46, %v2430_v40  ;;  %v1437_v44 = vpop.eup %1436  ;;  %1448 = vpow2.f32 %v772_v35  ;;  %v780_v50 = vmul.f32 1.442695, %v657_v55  ;;  %v2964_v38 = vld [vmem:[#allocation34_spill] sm:$0xff]  ;;  %v2966_v46 = vld [vmem:[#allocation72_spill] sm:$0xff] }
 0x25d   :  { %v661_v8 = vsub.f32 %v2961_v62, %v596_v39  ;;  %v912_v2 = vadd.f32 %v911_v57, %v2436_v32  ;;  %v1439_v12 = vpop.eup %1438  ;;  %vm2963_vm15 = vcmp.gt.f32.partialorder %v2962_v47, 0.0  ;;  %1450 = vpow2.f32 %v774_v49 }
 0x25e   :  { %v2459_v3 = vsel %vm2963_vm15, %v1433_v56, 0.0  ;;  %v876_v58 = vadd.f32 %v875_v4, %v2423_v11  ;;  %v782_v37 = vmul.f32 1.442695, %v658_v9  ;;  %v1441_v61 = vpop.eup %1440  ;;  %vm2965_vm0 = vcmp.gt.f32.partialorder %v2964_v38, 0.0  ;;  %v2968_v9 = vld [vmem:[#allocation35_spill] sm:$0xff] }
 0x25f   :  { %v2464_v7 = vsel %vm2965_vm0, %v1435_v34, 0.0  ;;  %1452 = vpow2.f32 %v776_v63  ;;  %v913_v35 = vadd.f32 %v912_v2, %v2459_v3  ;;  %v784_v55 = vmul.f32 1.442695, %v659_v28  ;;  %v1443_v39 = vpop.eup %1442  ;;  %v2971_v28 = vld [vmem:[#allocation73_spill] sm:$0xff] }
 0x260   :  { %vm2967_vm1 = vcmp.gt.f32.partialorder %v2966_v46, 0.0  ;;  %1454 = vpow2.f32 %v778_v43  ;;  %v786_v56 = vmul.f32 1.442695, %v660_v25  ;;  %v877_v49 = vadd.f32 %v876_v58, %v2464_v7  ;;  %v1445_v4 = vpop.eup %1444  ;;  %v2974_v25 = vld [vmem:[#allocation36_spill] sm:$0xff]  ;;  %v2978_v46 = vld [vmem:[#allocation37_spill] sm:$0xff] }
 0x261   :  { %v2469_v57 = vsel %vm2967_vm1, %v1437_v44, 0.0  ;;  %vm2969_vm2 = vcmp.gt.f32.partialorder %v2968_v9, 0.0  ;;  %1456 = vpow2.f32 %v780_v50  ;;  %v788_v34 = vmul.f32 1.442695, %v661_v8  ;;  %v1447_v2 = vpop.eup %1446  ;;  %v2976_v8 = vld [vmem:[#allocation76_spill] sm:$0xff]  ;;  %v2980_v9 = vld [vmem:[#allocation77_spill] sm:$0xff] }
 0x262   :  { %v2474_v62 = vsel %vm2969_vm2, %v1439_v12, 0.0  ;;  %v914_v63 = vadd.f32 %v913_v35, %v2469_v57  ;;  %vm2972_vm3 = vcmp.gt.f32.partialorder %v2971_v28, 0.0  ;;  %1458 = vpow2.f32 %v782_v37  ;;  %v1449_v43 = vpop.eup %1448  ;;  %v2982_v28 = vld [vmem:[#allocation38_spill] sm:$0xff] }
 0x263   :  { %2970 = vst [vmem:[#allocation67_spill] sm:$0xff] %v2474_v62  ;;  %v2479_v47 = vsel %vm2972_vm3, %v1441_v61, 0.0  ;;  %v878_v44 = vadd.f32 %v877_v49, %v2474_v62  ;;  %vm2975_vm4 = vcmp.gt.f32.partialorder %v2974_v25, 0.0  ;;  %1460 = vpow2.f32 %v784_v55  ;;  %v1451_v50 = vpop.eup %1450 }
 0x264   :  { %2973 = vst [vmem:[#allocation13_spill] sm:$0xff] %v2479_v47  ;;  %v2484_v58 = vsel %vm2975_vm4, %v1443_v39, 0.0  ;;  %v915_v12 = vadd.f32 %v914_v63, %v2479_v47  ;;  %vm2977_vm5 = vcmp.gt.f32.partialorder %v2976_v8, 0.0  ;;  %1462 = vpow2.f32 %v786_v56 }
 0x265   :  { %v2489_v38 = vsel %vm2977_vm5, %v1445_v4, 0.0  ;;  %v879_v61 = vadd.f32 %v878_v44, %v2484_v58  ;;  %v1453_v35 = vpop.eup %1452  ;;  %vm2979_vm10 = vcmp.gt.f32.partialorder %v2978_v46, 0.0  ;;  %1464 = vpow2.f32 %v788_v34  ;;  %v2987_v46 = vld [vmem:[#allocation39_spill] sm:$0xff] }
 0x266   :  { %v2494_v37 = vsel %vm2979_vm10, %v1447_v2, 0.0  ;;  %v916_v39 = vadd.f32 %v915_v12, %v2489_v38  ;;  %v1455_v49 = vpop.eup %1454  ;;  %vm2981_vm11 = vcmp.gt.f32.partialorder %v2980_v9, 0.0  ;;  %vm2983_vm12 = vcmp.gt.f32.partialorder %v2982_v28, 0.0  ;;  %v2992_v2 = vld [vmem:[#allocation40_spill] sm:$0xff] }
 0x267   :  { %v2499_v55 = vsel %vm2981_vm11, %v1449_v43, 0.0  ;;  %v880_v63 = vadd.f32 %v879_v61, %v2494_v37  ;;  %v1457_v4 = vpop.eup %1456  ;;  %v2504_v56 = vsel %vm2983_vm12, %v1451_v50, 0.0  ;;  %v2509_v34 = vsel %vm229_vm6, %v1453_v35, 0.0 }
 0x268   :  { %2984 = vst [vmem:[#allocation44_spill] sm:$0xff] %v2504_v56  ;;  %v917_v44 = vadd.f32 %v916_v39, %v2499_v55  ;;  %v1459_v25 = vpop.eup %1458  ;;  %vm2988_vm13 = vcmp.gt.f32.partialorder %v2987_v46, 0.0  ;;  %v2519_v50 = vsel %vm231_vm7, %v1457_v4, 0.0  ;;  %vm2993_vm6 = vcmp.gt.f32.partialorder %v2992_v2, 0.0  ;;  %v2997_v46 = vld [vmem:[#allocation41_spill] sm:$0xff] }
 0x269   :  { %2986 = vst [vmem:[#allocation14_spill] sm:$0xff] %v2509_v34  ;;  %v881_v12 = vadd.f32 %v880_v63, %v2504_v56  ;;  %v1461_v8 = vpop.eup %1460  ;;  %v2514_v43 = vsel %vm2988_vm13, %v1455_v49, 0.0  ;;  %v2525_v63 = vsel %vm2993_vm6, %v1459_v25, 0.0  ;;  %vm2998_vm14 = vcmp.gt.f32.partialorder %v2997_v46, 0.0 }
 0x26a   :  { %2989 = vst [vmem:[#allocation45_spill] sm:$0xff] %v2514_v43  ;;  %v918_v61 = vadd.f32 %v917_v44, %v2509_v34  ;;  %v1463_v9 = vpop.eup %1462  ;;  %v2529_v49 = vsel %vm233_vm8, %v1461_v8, 0.0 }
 0x26b   :  { %2991 = vst [vmem:[#allocation54_spill] sm:$0xff] %v2519_v50  ;;  %v882_v39 = vadd.f32 %v881_v12, %v2514_v43  ;;  %v1465_v47 = vpop.eup %1464  ;;  %v2534_v28 = vsel %vm2998_vm14, %v1463_v9, 0.0 }
 0x26c   :  { %v919_v35 = vadd.f32 %v918_v61, %v2519_v50  ;;  %2994 = vst [vmem:[#allocation89_spill] sm:$0xff] %v2525_v63  ;;  %v2539_v34 = vsel %vm235_vm9, %v1465_v47, 0.0 }
 0x26d   :  { %2996 = vst [vmem:[#allocation32_spill] sm:$0xff] %v2529_v49  ;;  %v883_v44 = vadd.f32 %v882_v39, %v2525_v63 }
 0x26e   :  { %2999 = vst [vmem:[#allocation58_spill] sm:$0xff] %v2534_v28  ;;  %v920_v4 = vadd.f32 %v919_v35, %v2529_v49 }
 0x26f   :  { %3001 = vst [vmem:[#allocation66_spill] sm:$0xff] %v2539_v34  ;;  %v884_v61 = vadd.f32 %v883_v44, %v2534_v28 }
 0x270   :  { %v921_v25 = vadd.f32 %v920_v4, %v2539_v34 }
 0x271   :  { %v885_v2 = vrot.slane %v884_v61, 4 }
 0x272   :  { %v922_v56 = vrot.slane %v921_v25, 4 }
 0x273   :  { %v886_v8 = vadd.f32 %v885_v2, %v884_v61 }
 0x274   :  { %v923_v50 = vadd.f32 %v922_v56, %v921_v25 }
 0x275   :  { %v887_v43 = vrot.slane %v886_v8, 2 }
 0x276   :  { %v924_v39 = vrot.slane %v923_v50, 2 }
 0x277   :  { %v888_v63 = vadd.f32 %v887_v43, %v886_v8 }
 0x278   :  { %v925_v46 = vadd.f32 %v924_v39, %v923_v50 }
 0x279   :  { %v889_v9 = vrot.slane %v888_v63, 1 }
 0x27a   :  { %v926_v62 = vrot.slane %v925_v46, 1 }
 0x27b   :  { %v890_v22 = vadd.f32 %v889_v9, %v888_v63 }
 0x27c   :  { %v927_v35 = vadd.f32 %v926_v62, %v925_v46 }
 0x27d   :  { %1466 = vrcp.f32 %v890_v22  ;;  %v939_v34 = vand.u32 2147483648, %v890_v22  ;;  %v937_v25 = vand.u32 2147483647, %v890_v22  ;;  %vm933_vm9 = vweird.f32 %v890_v22 }
 0x27e   :  { %1468 = vrcp.f32 %v927_v35  ;;  %v953_v52 = vand.u32 2147483648, %v927_v35  ;;  %v951_v43 = vand.u32 2147483647, %v927_v35  ;;  %vm947_vm15 = vweird.f32 %v927_v35 }
 0x27f   :  { %v940_v62 = vor.u32 1.1754944e-38, %v939_v34  ;;  %vm938_vm2 = vcmp.eq.f32.partialorder %v937_v25, 8.507059e+37 }
 0x280   :  { %v954_v56 = vor.u32 1.1754944e-38, %v953_v52  ;;  %vm952_vm3 = vcmp.eq.f32.partialorder %v951_v43, 8.507059e+37 }
 0x283   :  { %v1467_v47 = vpop.eup %1466 }
 0x284   :  { %v1469_v12 = vpop.eup %1468  ;;  %v929_v49 = vmul.f32 %v1467_v47, %v890_v22  ;;  %vm934_vm7 = vweird.f32 %v1467_v47 }
 0x285   :  { %v943_v44 = vmul.f32 %v1469_v12, %v927_v35  ;;  %vm948_vm8 = vweird.f32 %v1469_v12  ;;  %vm935_vm0 = vmor %vm933_vm9, %vm934_vm7 }
 0x286   :  { %v930_v28 = vsub.f32 1.0, %v929_v49  ;;  %vm949_vm1 = vmor %vm947_vm15, %vm948_vm8 }
 0x287   :  { %v944_v4 = vsub.f32 1.0, %v943_v44 }
 0x288   :  { %v931_v61 = vmul.f32 %v1467_v47, %v930_v28 }
 0x289   :  { %v945_v2 = vmul.f32 %v1469_v12, %v944_v4 }
 0x28a   :  { %v932_v50 = vadd.f32 %v1467_v47, %v931_v61 }
 0x28b   :  { %v946_v63 = vadd.f32 %v1469_v12, %v945_v2 }
 0x28c   :  { %v936_v8 = vsel %vm935_vm0, %v1467_v47, %v932_v50 }
 0x28d   :  { %v950_v49 = vsel %vm949_vm1, %v1469_v12, %v946_v63  ;;  %v941_v39 = vsel %vm938_vm2, %v940_v62, %v936_v8 }
 0x28e   :  { %v955_v46 = vsel %vm952_vm3, %v954_v56, %v950_v49  ;;  %956 = vxpose.xlu1.b32.start.end [1/1] (short) %v941_v39, 128 }
 0x28f   :  { %988 = vxpose.xlu2.b32.start.end [1/1] (short) %v955_v46, 128 }
 0x328   :  { %v1004_v28 = vpop.trf.xlu2 }
 0x330   :  { %v1005_v9 = vpop.trf.xlu2 }
 0x332   :  { %v972_v44 = vpop.trf.xlu1 }
 0x333   :  { %1022 = vperm.xlu0 %1337, %v972_v44  }
 0x338   :  { %v1006_v4 = vpop.trf.xlu2 }
 0x33a   :  { %v973_v22 = vpop.trf.xlu1 }
 0x33b   :  { %1112 = vperm.xlu0 %1337, %v1006_v4  }
 0x340   :  { %v1007_v35 = vpop.trf.xlu2 }
 0x342   :  { %v974_v61 = vpop.trf.xlu1 }
 0x348   :  { %v1008_v34 = vpop.trf.xlu2 }
 0x34a   :  { %v975_v2 = vpop.trf.xlu1 }
 0x34b   :  { %1037 = vperm.xlu0 %1337, %v975_v2  }
 0x350   :  { %v1009_v52 = vpop.trf.xlu2 }
 0x352   :  { %v976_v47 = vpop.trf.xlu1 }
 0x353   :  { %1042 = vperm.xlu0 %1337, %v976_v47  }
 0x358   :  { %v1010_v12 = vpop.trf.xlu2 }
 0x35a   :  { %v977_v25 = vpop.trf.xlu1 }
 0x35b   :  { %1047 = vperm.xlu0 %1337, %v977_v25  }
 0x360   :  { %1102 = vperm.xlu1 %1335, %v1004_v28   ;;  %v1011_v43 = vpop.trf.xlu2 }
 0x362   :  { %v978_v50 = vpop.trf.xlu1 }
 0x363   :  { %1127 = vperm.xlu0 %1337, %v1009_v52  }
 0x368   :  { %1032 = vperm.xlu1 %1335, %v974_v61   ;;  %v1012_v63 = vpop.trf.xlu2 }
 0x36a   :  { %v979_v62 = vpop.trf.xlu1 }
 0x36b   :  { %1052 = vperm.xlu0 %1337, %v978_v50  }
 0x370   :  { %1027 = vperm.xlu2 %1336, %v973_v22   ;;  %1117 = vperm.xlu1 %1335, %v1007_v35   ;;  %v1013_v56 = vpop.trf.xlu2 }
 0x372   :  { %v980_v8 = vpop.trf.xlu1 }
 0x373   :  { %1142 = vperm.xlu0 %1337, %v1012_v63  }
 0x378   :  { %1107 = vperm.xlu2 %1336, %v1005_v9   ;;  %1132 = vperm.xlu1 %1335, %v1010_v12   ;;  %v1014_v49 = vpop.trf.xlu2 }
 0x37a   :  { %v981_v39 = vpop.trf.xlu1 }
 0x37b   :  { %1067 = vperm.xlu0 %1337, %v981_v39  }
 0x380   :  { %1122 = vperm.xlu2 %1336, %v1008_v34   ;;  %1057 = vperm.xlu1 %1335, %v979_v62   ;;  %v1015_v46 = vpop.trf.xlu2 }
 0x382   :  { %v982_v28 = vpop.trf.xlu1 }
 0x383   :  { %1157 = vperm.xlu0 %1337, %v1015_v46  }
 0x388   :  { %1137 = vperm.xlu2 %1336, %v1011_v43   ;;  %1147 = vperm.xlu1 %1335, %v1013_v56   ;;  %v1016_v44 = vpop.trf.xlu2 }
 0x38a   :  { %v983_v4 = vpop.trf.xlu1 }
 0x390   :  { %1062 = vperm.xlu2 %1336, %v980_v8   ;;  %1072 = vperm.xlu1 %1335, %v982_v28   ;;  %v1017_v22 = vpop.trf.xlu2 }
 0x392   :  { %v984_v35 = vpop.trf.xlu1 }
 0x393   :  { %1082 = vperm.xlu0 %1337, %v984_v35  }
 0x398   :  { %1152 = vperm.xlu2 %1336, %v1014_v49   ;;  %1162 = vperm.xlu1 %1335, %v1016_v44   ;;  %v1018_v61 = vpop.trf.xlu2 }
 0x39a   :  { %v985_v9 = vpop.trf.xlu1 }
 0x3a0   :  { %1077 = vperm.xlu2 %1336, %v983_v4   ;;  %1087 = vperm.xlu1 %1335, %v985_v9   ;;  %v1019_v52 = vpop.trf.xlu2 }
 0x3a2   :  { %v986_v34 = vpop.trf.xlu1 }
 0x3a5   :  { %v1023_v2 = vpop.permute.xlu0 %1022 }
 0x3a6   :  { %v1180_v47 = vmul.f32 %v1023_v2, %v2143_v1  ;;  %v1181_v12 = vmul.f32 %v1023_v2, %v2147_v54 }
 0x3a8   :  { %1244 = vst [vmem:[#allocation7] sm:$0xff] %v1180_v47  ;;  %1092 = vperm.xlu2 %1336, %v986_v34   ;;  %1177 = vperm.xlu1 %1335, %v1019_v52  }
 0x3a9   :  { %1245 = vst [vmem:[#allocation7 + $0x8] sm:$0xff] %v1181_v12 }
 0x3aa   :  { %v987_v25 = vpop.trf.xlu1 }
 0x3ab   :  { %1097 = vperm.xlu0 %1337, %v987_v25  }
 0x3ad   :  { %v1113_v43 = vpop.permute.xlu0 %1112 }
 0x3ae   :  { %v1216_v50 = vmul.f32 %v1113_v43, %v2389_v18  ;;  %v1217_v63 = vmul.f32 %v1113_v43, %v2393_v51 }
 0x3b0   :  { %1280 = vst [vmem:[#allocation7 + $0x120] sm:$0xff] %v1216_v50  ;;  %1167 = vperm.xlu2 %1336, %v1017_v22  }
 0x3b1   :  { %1281 = vst [vmem:[#allocation7 + $0x128] sm:$0xff] %v1217_v63 }
 0x3b3   :  { %1172 = vperm.xlu0 %1337, %v1018_v61  }
 0x3bd   :  { %v1038_v62 = vpop.permute.xlu0 %1037 }
 0x3be   :  { %v1186_v1 = vmul.f32 %v1038_v62, %v2178_v16  ;;  %v1187_v54 = vmul.f32 %v1038_v62, %v2185_v60 }
 0x3c0   :  { %1250 = vst [vmem:[#allocation7 + $0x30] sm:$0xff] %v1186_v1 }
 0x3c1   :  { %1251 = vst [vmem:[#allocation7 + $0x38] sm:$0xff] %v1187_v54 }
 0x3c5   :  { %v1043_v56 = vpop.permute.xlu0 %1042 }
 0x3c6   :  { %v1188_v8 = vmul.f32 %v1043_v56, %v2195_v15  ;;  %v1189_v49 = vmul.f32 %v1043_v56, %v2202_v27 }
 0x3c8   :  { %1252 = vst [vmem:[#allocation7 + $0x40] sm:$0xff] %v1188_v8 }
 0x3c9   :  { %1253 = vst [vmem:[#allocation7 + $0x48] sm:$0xff] %v1189_v49  ;;  %v3006_v49 = vld [vmem:[#allocation23_spill] sm:$0xff] }
 0x3ca   :  { %v1028_v18 = vpop.permute.xlu2 %1027 }
 0x3cb   :  { %v1182_v51 = vmul.f32 %v1028_v18, %v2129_v13  ;;  %v1183_v39 = vmul.f32 %v1028_v18, %v2137_v10 }
 0x3cd   :  { %1246 = vst [vmem:[#allocation7 + $0x10] sm:$0xff] %v1182_v51  ;;  %v1048_v46 = vpop.permute.xlu0 %1047  ;;  %v3007_v51 = vld [vmem:[#allocation53_spill] sm:$0xff] }
 0x3ce   :  { %1247 = vst [vmem:[#allocation7 + $0x18] sm:$0xff] %v1183_v39  ;;  %v1190_v16 = vmul.f32 %v1048_v46, %v2219_v48  ;;  %v1191_v60 = vmul.f32 %v1048_v46, %v2225_v45  ;;  %v3008_v46 = vld [vmem:[#allocation49_spill] sm:$0xff] }
 0x3d0   :  { %1254 = vst [vmem:[#allocation7 + $0x50] sm:$0xff] %v1190_v16 }
 0x3d1   :  { %1255 = vst [vmem:[#allocation7 + $0x58] sm:$0xff] %v1191_v60  ;;  %v3009_v60 = vld [vmem:[#allocation63_spill] sm:$0xff] }
 0x3d2   :  { %v1108_v28 = vpop.permute.xlu2 %1107  ;;  %v1103_v15 = vpop.permute.xlu1 %1102 }
 0x3d3   :  { %v1214_v27 = vmul.f32 %v1108_v28, %v2327_v36  ;;  %v1215_v44 = vmul.f32 %v1108_v28, %v2332_v42  ;;  %v1212_v4 = vmul.f32 %v1103_v15, %v2348_v41  ;;  %v1213_v13 = vmul.f32 %v1103_v15, %v2358_v53 }
 0x3d5   :  { %1278 = vst [vmem:[#allocation7 + $0x110] sm:$0xff] %v1214_v27  ;;  %v1128_v10 = vpop.permute.xlu0 %1127  ;;  %v3010_v27 = vld [vmem:[#allocation20_spill] sm:$0xff] }
 0x3d6   :  { %1279 = vst [vmem:[#allocation7 + $0x118] sm:$0xff] %v1215_v44  ;;  %v1222_v22 = vmul.f32 %v1128_v10, %v2400_v17  ;;  %v1223_v48 = vmul.f32 %v1128_v10, %v2404_v59 }
 0x3d7   :  { %1276 = vst [vmem:[#allocation7 + $0x100] sm:$0xff] %v1212_v4  ;;  %v3011_v4 = vld [vmem:[#allocation12_spill] sm:$0xff] }
 0x3d8   :  { %1277 = vst [vmem:[#allocation7 + $0x108] sm:$0xff] %v1213_v13 }
 0x3d9   :  { %1286 = vst [vmem:[#allocation7 + $0x150] sm:$0xff] %v1222_v22 }
 0x3da   :  { %1287 = vst [vmem:[#allocation7 + $0x158] sm:$0xff] %v1223_v48  ;;  %v1123_v45 = vpop.permute.xlu2 %1122  ;;  %v1033_v35 = vpop.permute.xlu1 %1032  ;;  %v3012_v48 = vld [vmem:[#allocation45_spill] sm:$0xff] }
 0x3db   :  { %v1220_v36 = vmul.f32 %v1123_v45, %v2410_v24  ;;  %v1221_v42 = vmul.f32 %v1123_v45, %v2414_v6  ;;  %v1184_v41 = vmul.f32 %v1033_v35, %v2163_v21  ;;  %v1185_v53 = vmul.f32 %v1033_v35, %v2173_v29  ;;  %v3013_v35 = vld [vmem:[#allocation54_spill] sm:$0xff] }
 0x3dd   :  { %1284 = vst [vmem:[#allocation7 + $0x140] sm:$0xff] %v1220_v36  ;;  %v1053_v9 = vpop.permute.xlu0 %1052 }
 0x3de   :  { %1285 = vst [vmem:[#allocation7 + $0x148] sm:$0xff] %v1221_v42  ;;  %v1192_v17 = vmul.f32 %v1053_v9, %v2229_v5  ;;  %v1193_v59 = vmul.f32 %v1053_v9, %v2236_v26  ;;  %v3014_v42 = vld [vmem:[#allocation44_spill] sm:$0xff] }
 0x3df   :  { %1248 = vst [vmem:[#allocation7 + $0x20] sm:$0xff] %v1184_v41 }
 0x3e0   :  { %1249 = vst [vmem:[#allocation7 + $0x28] sm:$0xff] %v1185_v53  ;;  %v3015_v53 = vld [vmem:[#allocation14_spill] sm:$0xff] }
 0x3e1   :  { %1256 = vst [vmem:[#allocation7 + $0x60] sm:$0xff] %v1192_v17 }
 0x3e2   :  { %1257 = vst [vmem:[#allocation7 + $0x68] sm:$0xff] %v1193_v59  ;;  %v1138_v61 = vpop.permute.xlu2 %1137  ;;  %v1118_v34 = vpop.permute.xlu1 %1117  ;;  %v3016_v59 = vld [vmem:[#allocation50_spill] sm:$0xff] }
 0x3e3   :  { %v1226_v24 = vmul.f32 %v1138_v61, %v2423_v11  ;;  %v1227_v6 = vmul.f32 %v1138_v61, %v2459_v3  ;;  %v1218_v21 = vmul.f32 %v1118_v34, %v2368_v14  ;;  %v1219_v29 = vmul.f32 %v1118_v34, %v2373_v31  ;;  %v3017_v34 = vld [vmem:[#allocation43_spill] sm:$0xff] }
 0x3e5   :  { %1290 = vst [vmem:[#allocation7 + $0x170] sm:$0xff] %v1226_v24  ;;  %v1143_v2 = vpop.permute.xlu0 %1142 }
 0x3e6   :  { %1291 = vst [vmem:[#allocation7 + $0x178] sm:$0xff] %v1227_v6  ;;  %v1228_v5 = vmul.f32 %v1143_v2, %v2464_v7  ;;  %v1229_v26 = vmul.f32 %v1143_v2, %v2469_v57  ;;  %v3019_v2 = vld [vmem:[#allocation66_spill] sm:$0xff] }
 0x3e7   :  { %1282 = vst [vmem:[#allocation7 + $0x130] sm:$0xff] %v1218_v21  ;;  %v3018_v21 = vld [vmem:[#allocation58_spill] sm:$0xff] }
 0x3e8   :  { %1283 = vst [vmem:[#allocation7 + $0x138] sm:$0xff] %v1219_v29 }
 0x3e9   :  { %1292 = vst [vmem:[#allocation7 + $0x180] sm:$0xff] %v1228_v5 }
 0x3ea   :  { %1293 = vst [vmem:[#allocation7 + $0x188] sm:$0xff] %v1229_v26  ;;  %v1063_v52 = vpop.permute.xlu2 %1062  ;;  %v1133_v47 = vpop.permute.xlu1 %1132 }
 0x3eb   :  { %v1196_v11 = vmul.f32 %v1063_v52, %v2257_v20  ;;  %v1197_v3 = vmul.f32 %v1063_v52, %v2264_v0  ;;  %v1224_v14 = vmul.f32 %v1133_v47, %v2430_v40  ;;  %v1225_v31 = vmul.f32 %v1133_v47, %v2436_v32  ;;  %v3020_v52 = vld [vmem:[#allocation88_spill] sm:$0xff] }
 0x3ed   :  { %1260 = vst [vmem:[#allocation7 + $0x80] sm:$0xff] %v1196_v11  ;;  %v1068_v12 = vpop.permute.xlu0 %1067  ;;  %v3021_v11 = vld [vmem:[#allocation33_spill] sm:$0xff] }
 0x3ee   :  { %1261 = vst [vmem:[#allocation7 + $0x88] sm:$0xff] %v1197_v3  ;;  %v1198_v7 = vmul.f32 %v1068_v12, %v2281_v23  ;;  %v1199_v57 = vmul.f32 %v1068_v12, %v2289_v30 }
 0x3ef   :  { %1288 = vst [vmem:[#allocation7 + $0x160] sm:$0xff] %v1224_v14 }
 0x3f0   :  { %1289 = vst [vmem:[#allocation7 + $0x168] sm:$0xff] %v1225_v31  ;;  %v3022_v31 = vld [vmem:[#allocation89_spill] sm:$0xff] }
 0x3f1   :  { %1262 = vst [vmem:[#allocation7 + $0x90] sm:$0xff] %v1198_v7  ;;  %v3023_v7 = vld [vmem:[#allocation32_spill] sm:$0xff] }
 0x3f2   :  { %1263 = vst [vmem:[#allocation7 + $0x98] sm:$0xff] %v1199_v57  ;;  %v1153_v25 = vpop.permute.xlu2 %1152  ;;  %v1058_v43 = vpop.permute.xlu1 %1057 }
 0x3f3   :  { %v1232_v20 = vmul.f32 %v1153_v25, %v2484_v58  ;;  %v1233_v0 = vmul.f32 %v1153_v25, %v2489_v38  ;;  %v1194_v40 = vmul.f32 %v1058_v43, %v2249_v19  ;;  %v1195_v32 = vmul.f32 %v1058_v43, %v2253_v33  ;;  %v3002_v58 = vld [vmem:[#allocation11_spill] sm:$0xff]  ;;  %v3003_v38 = vld [vmem:[#allocation42_spill] sm:$0xff]  ;;  %v3005_v33 = vld [vmem:[#allocation13_spill] sm:$0xff] }
 0x3f4   :  { %v3004_v19 = vld [vmem:[#allocation67_spill] sm:$0xff] }
 0x3f5   :  { %1296 = vst [vmem:[#allocation7 + $0x1a0] sm:$0xff] %v1232_v20  ;;  %v1158_v50 = vpop.permute.xlu0 %1157 }
 0x3f6   :  { %1297 = vst [vmem:[#allocation7 + $0x1a8] sm:$0xff] %v1233_v0  ;;  %v1234_v23 = vmul.f32 %v1158_v50, %v2494_v37  ;;  %v1235_v30 = vmul.f32 %v1158_v50, %v2499_v55 }
 0x3f7   :  { %1258 = vst [vmem:[#allocation7 + $0x70] sm:$0xff] %v1194_v40 }
 0x3f8   :  { %1259 = vst [vmem:[#allocation7 + $0x78] sm:$0xff] %v1195_v32 }
 0x3f9   :  { %1298 = vst [vmem:[#allocation7 + $0x1b0] sm:$0xff] %v1234_v23 }
 0x3fa   :  { %1299 = vst [vmem:[#allocation7 + $0x1b8] sm:$0xff] %v1235_v30  ;;  %v1078_v63 = vpop.permute.xlu2 %1077  ;;  %v1148_v62 = vpop.permute.xlu1 %1147 }
 0x3fb   :  { %v1202_v1 = vmul.f32 %v1078_v63, %v3002_v58  ;;  %v1203_v54 = vmul.f32 %v1078_v63, %v3003_v38  ;;  %v1230_v56 = vmul.f32 %v1148_v62, %v3004_v19  ;;  %v1231_v8 = vmul.f32 %v1148_v62, %v3005_v33 }
 0x3fd   :  { %1266 = vst [vmem:[#allocation7 + $0xb0] sm:$0xff] %v1202_v1 }
 0x3fe   :  { %1267 = vst [vmem:[#allocation7 + $0xb8] sm:$0xff] %v1203_v54 }
 0x3ff   :  { %1294 = vst [vmem:[#allocation7 + $0x190] sm:$0xff] %v1230_v56 }
 0x400   :  { %1295 = vst [vmem:[#allocation7 + $0x198] sm:$0xff] %v1231_v8 }
 0x402   :  { %v1093_v37 = vpop.permute.xlu2 %1092  ;;  %v1073_v55 = vpop.permute.xlu1 %1072 }
 0x403   :  { %v1208_v18 = vmul.f32 %v1093_v37, %v3006_v49  ;;  %v1209_v39 = vmul.f32 %v1093_v37, %v3007_v51  ;;  %v1200_v16 = vmul.f32 %v1073_v55, %v3008_v46  ;;  %v1201_v28 = vmul.f32 %v1073_v55, %v3009_v60 }
 0x405   :  { %1272 = vst [vmem:[#allocation7 + $0xe0] sm:$0xff] %v1208_v18  ;;  %v1083_v15 = vpop.permute.xlu0 %1082 }
 0x406   :  { %1273 = vst [vmem:[#allocation7 + $0xe8] sm:$0xff] %v1209_v39  ;;  %v1204_v44 = vmul.f32 %v1083_v15, %v3010_v27  ;;  %v1205_v13 = vmul.f32 %v1083_v15, %v3011_v4 }
 0x407   :  { %1264 = vst [vmem:[#allocation7 + $0xa0] sm:$0xff] %v1200_v16 }
 0x408   :  { %1265 = vst [vmem:[#allocation7 + $0xa8] sm:$0xff] %v1201_v28 }
 0x409   :  { %1268 = vst [vmem:[#allocation7 + $0xc0] sm:$0xff] %v1204_v44 }
 0x40a   :  { %1269 = vst [vmem:[#allocation7 + $0xc8] sm:$0xff] %v1205_v13  ;;  %v1168_v10 = vpop.permute.xlu2 %1167  ;;  %v1163_v22 = vpop.permute.xlu1 %1162 }
 0x40b   :  { %v1238_v45 = vmul.f32 %v1168_v10, %v3012_v48  ;;  %v1239_v36 = vmul.f32 %v1168_v10, %v3013_v35  ;;  %v1236_v41 = vmul.f32 %v1163_v22, %v3014_v42  ;;  %v1237_v9 = vmul.f32 %v1163_v22, %v3015_v53 }
 0x40d   :  { %1302 = vst [vmem:[#allocation7 + $0x1d0] sm:$0xff] %v1238_v45 }
 0x40e   :  { %1303 = vst [vmem:[#allocation7 + $0x1d8] sm:$0xff] %v1239_v36 }
 0x40f   :  { %1300 = vst [vmem:[#allocation7 + $0x1c0] sm:$0xff] %v1236_v41 }
 0x410   :  { %1301 = vst [vmem:[#allocation7 + $0x1c8] sm:$0xff] %v1237_v9 }
 0x412   :  { %v1088_v17 = vpop.permute.xlu1 %1087 }
 0x413   :  { %v1206_v61 = vmul.f32 %v1088_v17, %v3016_v59  ;;  %v1207_v24 = vmul.f32 %v1088_v17, %v3017_v34 }
 0x415   :  { %1270 = vst [vmem:[#allocation7 + $0xd0] sm:$0xff] %v1206_v61 }
 0x416   :  { %1271 = vst [vmem:[#allocation7 + $0xd8] sm:$0xff] %v1207_v24 }
 0x41a   :  { %v1178_v6 = vpop.permute.xlu1 %1177 }
 0x41b   :  { %v1242_v29 = vmul.f32 %v1178_v6, %v3018_v21  ;;  %v1243_v5 = vmul.f32 %v1178_v6, %v3019_v2 }
 0x41d   :  { %1306 = vst [vmem:[#allocation7 + $0x1f0] sm:$0xff] %v1242_v29  ;;  %v1098_v26 = vpop.permute.xlu0 %1097 }
 0x41e   :  { %1307 = vst [vmem:[#allocation7 + $0x1f8] sm:$0xff] %v1243_v5  ;;  %v1210_v47 = vmul.f32 %v1098_v26, %v3020_v52  ;;  %v1211_v3 = vmul.f32 %v1098_v26, %v3021_v11 }
 0x420   :  { %1274 = vst [vmem:[#allocation7 + $0xf0] sm:$0xff] %v1210_v47 }
 0x421   :  { %1275 = vst [vmem:[#allocation7 + $0xf8] sm:$0xff] %v1211_v3 }
 0x425   :  { %v1173_v14 = vpop.permute.xlu0 %1172 }
 0x426   :  { %v1240_v12 = vmul.f32 %v1173_v14, %v3022_v31  ;;  %v1241_v57 = vmul.f32 %v1173_v14, %v3023_v7 }
 0x428   :  { %1304 = vst [vmem:[#allocation7 + $0x1e0] sm:$0xff] %v1240_v12 }
 0x429   :  { %1305 = vst [vmem:[#allocation7 + $0x1e8] sm:$0xff] %v1241_v57 }
 0x42a   :  { %1320 = dma.vmem_to_hbm [thread:$0]  %s1313_s1, 8192, %s1315_s23, [#allocation4], %s1562_s17, %s1562_s17, %s1563_s18  }
 0x42b   :  { %1559 = dma.done.wait [#allocation4], 8192  }
 0x42c   :  { %1560 = vsyncadd [#allocation4], 4294959104 }
 0x42d   :  { %1325 = vsyncpa [#allocation3], 1 }
 0x42e   :  { %1326 = vsyncpa [#allocation6], 1 }
 0x42f   :  { %1327 = vsyncpa [#allocation4], 1 }

</bundles_post_ra>
